<compile_context>
chip_gen: v7x
topology: tpu7x:2x2x1
jax: 0.10.0
libtpu: 0.0.40
codegen_flags: <defaults>
</compile_context>

<pallas_src>
import math

import jax
import jax.numpy as jnp
import numpy as np
from jax import lax
from jax.experimental import pallas as pl
from jax.experimental.pallas import tpu as pltpu


def _round_up(x, m):
    return ((x + m - 1) // m) * m


def _sublane(dtype):
    """Sublane packing granularity for a dtype (8 for 4-byte, 16 for 2-byte, 32 for 1-byte)."""
    return {4: 8, 2: 16, 1: 32}.get(jnp.dtype(dtype).itemsize, 8)


def _binarize_softmax(logits):
    """binarize(softmax(logits, dim=1)) exactly as the PyTorch Binarize.forward.

    Note: (probs == max) is intentionally multi-hot on exact ties, matching PyTorch.
    """
    probs = jax.nn.softmax(logits.astype(jnp.float32), axis=1)
    return (probs == jnp.max(probs, axis=1, keepdims=True)).astype(jnp.float32)


def _vmem_capacity_bytes():
    try:
        return int(pltpu.get_tpu_info().vmem_capacity_bytes)
    except Exception:
        return 128 * 1024 * 1024  # v5e/v6e default; conservative fallback


def _pick_tile_ho(HO, WO, tile_m_cap):
    """Smallest TILE_HO with TILE_HO*WO % 128 == 0 (lane-dense), scaled toward tile_m_cap.

    Non-divisor TILE_HO is allowed: the caller pads input rows / flattened output so every
    tile is full; the tail garbage is sliced away after the kernel.
    """
    base = 128 // math.gcd(WO, 128)            # minimal TILE_HO giving a 128-multiple TILE_M
    cap_mult = max(1, tile_m_cap // (base * WO))
    need_mult = -(-HO // base)                 # never tile past one padded tail tile
    return base * max(1, min(cap_mult, need_mult))


def _make_flgc_conv_kernel(TILE_HO, WO, CIN, KH, KW, SH, SW, DH, DW, TILE_HP,
                           K, K_PAD, dtype):
    """Builds a kernel closed over static conv geometry."""
    TILE_M = TILE_HO * WO

    def kernel(x_ref, w_ref, b_ref, o_ref, col_ref):
        # x_ref:   (1, Hp_pad, Wp, CIN)   padded NHWC image, VMEM-resident across h tiles
        # w_ref:   (COUT_PAD, K_PAD)      mask-fused weights; rows >= COUT and cols >= K are 0
        # b_ref:   (COUT_PAD, 1)          f32 bias (zero beyond COUT)
        # o_ref:   (1, COUT_PAD, TILE_M)  lane-dense output tile (Cout, flattened spatial)
        # col_ref: (TILE_M, K_PAD)        im2col scratch (VMEM)
        h = pl.program_id(1)
        row0 = pl.multiple_of(h * (TILE_HO * SH), TILE_HO * SH)
        xt = x_ref[0, pl.ds(row0, TILE_HP)]                 # (TILE_HP, Wp, CIN)

        # Zero the padding columns so the (zero-weight x scratch) product is exactly 0
        # (never 0 * garbage-NaN).  Tiny masked store; done every step because scratch is
        # per-core and persists across grid iterations.
        if K_PAD > K:
            col_ref[:, K:] = jnp.zeros((TILE_M, K_PAD - K), dtype=dtype)

        # im2col in (TILE_M, K) orientation: reshapes only -- no per-tap transpose, no
        # concatenate, no Python list of live patches.
        for kh in range(KH):
            for kw in range(KW):
                t = kh * KW + kw
                h0 = kh * DH
                w0 = kw * DW
                if SH == 1 and SW == 1:
                    patch = xt[h0:h0 + TILE_HO, w0:w0 + WO, :]
                else:
                    # TODO(synk): for SW > 1, pre-decimate the W axis once per tile instead
                    # of a strided slice per tap.
                    patch = lax.slice(
                        xt,
                        (h0, w0, 0),
                        (h0 + (TILE_HO - 1) * SH + 1, w0 + (WO - 1) * SW + 1, CIN),
                        (SH, SW, 1),
                    )
                col_ref[:, t * CIN:(t + 1) * CIN] = patch.reshape(TILE_M, CIN)

        # One deep MXU contraction; RHS contracts on its last dim ("trans_b") so no
        # explicit transpose is materialized.  f32 accumulation; bias added once per tile.
        res = lax.dot_general(
            w_ref[...], col_ref[...],
            dimension_numbers=(((1,), (1,)), ((), ())),
            preferred_element_type=jnp.float32)             # (COUT_PAD, TILE_M)
        res = res + b_ref[...]
        o_ref[0] = res.astype(o_ref.dtype)

    return kernel


def flgc2d_forward(x_nchw, weight_oihw, bias, in_map, out_map,
                   stride=(1, 1), padding=(0, 0), dilation=(1, 1)):
    """Flgc2d forward. x_nchw: (N, Cin, H, W). Returns (N, Cout, HO, WO)."""
    N, CIN, H, W = x_nchw.shape
    COUT, CIN_w, KH, KW = weight_oihw.shape
    assert CIN == CIN_w
    SH, SW = stride
    PH, PW = padding
    DH, DW = dilation
    x_dtype = x_nchw.dtype
    dt_bytes = jnp.dtype(x_dtype).itemsize

    # --- glue: learned group mask, folded into the weights once (tiny) ---
    out_bin = _binarize_softmax(out_map)                    # (Cout, G)
    in_bin = _binarize_softmax(in_map)                      # (Cin,  G)
    group_mask = out_bin @ in_bin.T                         # (Cout, Cin)
    w_masked = weight_oihw * group_mask[:, :, None, None].astype(weight_oihw.dtype)

    # Fused weight matrix: (Cout_pad, K_pad), column order (kh, kw, c).
    #  - Cout padded only to the sublane granularity (not 128).
    #  - K padded to a multiple of 128 with zeros (lane-aligned contraction).
    # Note: weights are cast to the activation dtype (bf16 activations -> bf16 MXU feed).
    K = KH * KW * CIN
    K_PAD = _round_up(K, 128)
    COUT_PAD = _round_up(COUT, _sublane(x_dtype))
    w2 = jnp.transpose(w_masked, (0, 2, 3, 1)).reshape(COUT, K)
    w2 = jnp.pad(w2, ((0, COUT_PAD - COUT), (0, K_PAD - K))).astype(x_dtype)
    b2 = jnp.pad(bias, (0, COUT_PAD - COUT)).astype(jnp.float32).reshape(COUT_PAD, 1)

    # --- conv geometry + tile selection ---
    Hp, Wp = H + 2 * PH, W + 2 * PW
    HO = (Hp - DH * (KH - 1) - 1) // SH + 1
    WO = (Wp - DW * (KW - 1) - 1) // SW + 1

    vmem_cap = _vmem_capacity_bytes()
    tile_m_cap = 2048 if vmem_cap >= (100 << 20) else 1024      # v5e/v6e vs v7x
    # Keep the im2col scratch bounded (~8 MiB) for large-CIN layers.
    tile_m_cap = min(tile_m_cap, max(128, ((8 << 20) // (K_PAD * dt_bytes)) // 128 * 128))

    TILE_HO = _pick_tile_ho(HO, WO, tile_m_cap)
    TILE_M = TILE_HO * WO                                    # multiple of 128 (lane-dense)
    n_h_tiles = pl.cdiv(HO, TILE_HO)
    TILE_HP = (TILE_HO - 1) * SH + (KH - 1) * DH + 1         # input rows per output tile
    Hp_pad = max(Hp, (n_h_tiles - 1) * TILE_HO * SH + TILE_HP)
    OUT_M = n_h_tiles * TILE_M                               # padded flattened spatial dim

    # --- glue: layout conversion + spatial padding ---
    # TODO(synk): fold the NCHW->NHWC transpose and the zero padding into the kernel
    # (zero-initialized VMEM slab / masked boundary taps) to avoid the extra HBM pass; and
    # add an H-tiled halo-DMA path (memory_space=pl.ANY + manual double buffering, with
    # pl.Buffered(1) on the constant-index weight/bias blocks) for very large Hp*Wp*CIN on
    # v7x's 64 MiB VMEM.
    x_nhwc = jnp.transpose(x_nchw, (0, 2, 3, 1))             # NCHW -> NHWC
    x_pad = jnp.pad(x_nhwc, ((0, 0), (PH, Hp_pad - H - PH), (PW, PW), (0, 0)))

    kernel = _make_flgc_conv_kernel(TILE_HO, WO, CIN, KH, KW, SH, SW, DH, DW,
                                    TILE_HP, K, K_PAD, x_dtype)

    # VMEM budget from the actual buffer sizes (pipeline inputs/outputs double-buffered),
    # capped at 75% of the chip's physical VMEM.
    img_b = Hp_pad * Wp * CIN * dt_bytes
    w_b = COUT_PAD * K_PAD * dt_bytes
    o_b = COUT_PAD * TILE_M * dt_bytes
    col_b = TILE_M * K_PAD * dt_bytes
    tmp_b = TILE_HP * Wp * CIN * dt_bytes + 2 * COUT_PAD * TILE_M * 4
    budget = 2 * (img_b + w_b + COUT_PAD * 4 + o_b) + col_b + tmp_b + (4 << 20)
    vmem_limit = int(min(max(budget, 16 << 20), int(vmem_cap * 0.75)))

    # Megacore: shard on n when batched (avoids both cores re-DMAing the same resident
    # image); use the h axis only when N == 1.
    dim_sems = ("parallel", "arbitrary") if N > 1 else ("arbitrary", "parallel")

    out = pl.pallas_call(
        kernel,
        out_shape=jax.ShapeDtypeStruct((N, COUT_PAD, OUT_M), x_dtype),
        grid_spec=pltpu.PrefetchScalarGridSpec(
            num_scalar_prefetch=0,
            grid=(N, n_h_tiles),
            in_specs=[
                # Full padded image per batch element; block index is constant across the
                # h axis so it is DMA'd once per n and stays VMEM-resident across h tiles.
                pl.BlockSpec((1, Hp_pad, Wp, CIN), lambda n, h: (n, 0, 0, 0)),
                pl.BlockSpec((COUT_PAD, K_PAD), lambda n, h: (0, 0)),
                pl.BlockSpec((COUT_PAD, 1), lambda n, h: (0, 0)),
            ],
            out_specs=pl.BlockSpec((1, COUT_PAD, TILE_M), lambda n, h: (n, 0, h)),
            scratch_shapes=[pltpu.VMEM((TILE_M, K_PAD), x_dtype)],
        ),
        compiler_params=pltpu.CompilerParams(
            dimension_semantics=dim_sems,
            vmem_limit_bytes=vmem_limit,
        ),
    )(x_pad, w2, b2)

    # (N, Cout_pad, OUT_M) -> NCHW: drop channel / spatial-tail padding (contiguous slice).
    return out[:, :COUT, :HO * WO].reshape(N, COUT, HO, WO)


def _reference_forward(x_nchw, weight_oihw, bias, in_map, out_map,
                       stride, padding, dilation):
    """Plain-JAX reference (for correctness check only)."""
    out_bin = _binarize_softmax(out_map)
    in_bin = _binarize_softmax(in_map)
    group_mask = out_bin @ in_bin.T
    w = weight_oihw * group_mask[:, :, None, None]
    y = lax.conv_general_dilated(
        x_nchw, w, window_strides=stride,
        padding=[(padding[0], padding[0]), (padding[1], padding[1])],
        rhs_dilation=dilation,
        dimension_numbers=("NCHW", "OIHW", "NCHW"))
    return y + bias[None, :, None, None]


if __name__ == "__main__":
    # Small config consistent with the module (groups default 8 -> use 4 at this scale).
    N, CIN, H, W = 2, 8, 16, 16
    COUT, KS = 16, 3
    GROUPS = 4
    stride, padding, dilation = (1, 1), (1, 1), (1, 1)

    key = jax.random.PRNGKey(0)
    k_x, k_w, k_b, k_in, k_out = jax.random.split(key, 5)

    x = jax.random.normal(k_x, (N, CIN, H, W), jnp.float32)
    weight = jax.random.normal(k_w, (COUT, CIN, KS, KS), jnp.float32) * 0.1
    bias = jax.random.normal(k_b, (COUT,), jnp.float32) * 0.1
    in_map = jax.random.normal(k_in, (CIN, GROUPS), jnp.float32)      # nn.init.normal_
    out_map = jax.random.normal(k_out, (COUT, GROUPS), jnp.float32)   # nn.init.normal_

    y = flgc2d_forward(x, weight, bias, in_map, out_map, stride, padding, dilation)
    y = jax.block_until_ready(y)

    y_ref = _reference_forward(x, weight, bias, in_map, out_map, stride, padding, dilation)
    np.testing.assert_allclose(np.asarray(y), np.asarray(y_ref), rtol=1e-4, atol=1e-4)

    print("KERNEL_OK")
</pallas_src>

<mosaic_0001>
module attributes {stable_mosaic.version = 11 : i64} {
  func.func @kernel(%arg0: i32, %arg1: i32, %arg2: memref<1x18x18x8xf32, #tpu.memory_space<vmem>>, %arg3: memref<16x128xf32, #tpu.memory_space<vmem>>, %arg4: memref<16x1xf32, #tpu.memory_space<vmem>>, %arg5: memref<1x16x256xf32, #tpu.memory_space<vmem>>, %arg6: memref<256x128xf32, #tpu.memory_space<vmem>>) attributes {dimension_semantics = [#tpu.dimension_semantics<parallel>, #tpu.dimension_semantics<arbitrary>], iteration_bounds = array<i64: 2, 1>, scalar_prefetch = 0 : i64, scratch_operands = 1 : i64, tpu.core_type = #tpu.core_type<tc>, window_params = [{transform_indices = @transform_0, window_bounds = array<i64: 1, 18, 18, 8>}, {pipeline_mode = #tpu.pipeline_mode<synchronous>, transform_indices = @transform_1, window_bounds = array<i64: 16, 128>}, {pipeline_mode = #tpu.pipeline_mode<synchronous>, transform_indices = @transform_2, window_bounds = array<i64: 16, 1>}, {transform_indices = @transform_3, window_bounds = array<i64: 1, 16, 256>}]} {
    %c16_i32 = arith.constant 16 : i32
    %0 = arith.muli %arg1, %c16_i32 : i32
    %1 = tpu.assume_multiple %0, 16 : i32
    %c0 = arith.constant 0 : index
    %2 = arith.index_cast %1 : i32 to index
    %c0_0 = arith.constant 0 : index
    %c0_1 = arith.constant 0 : index
    %3 = vector.load %arg2[%c0, %2, %c0_0, %c0_1] : memref<1x18x18x8xf32, #tpu.memory_space<vmem>>, vector<1x18x18x8xf32>
    %4 = vector.shape_cast %3 : vector<1x18x18x8xf32> to vector<18x18x8xf32>
    %cst = arith.constant 0.000000e+00 : f32
    %5 = vector.broadcast %cst : f32 to vector<256x56xf32>
    %c0_2 = arith.constant 0 : index
    %c72 = arith.constant 72 : index
    %6 = vector.load %arg6[%c0_2, %c72] : memref<256x128xf32, #tpu.memory_space<vmem>>, vector<256x56xf32>
    tpu.vector_store %arg6[%c0_2, %c72], %5 {strides = array<i32>} : memref<256x128xf32, #tpu.memory_space<vmem>>, vector<256x56xf32>,
    %7 = vector.extract_strided_slice %4 {offsets = [0, 0, 0], sizes = [16, 16, 8], strides = [1, 1, 1]} : vector<18x18x8xf32> to vector<16x16x8xf32>
    %8 = vector.shape_cast %7 : vector<16x16x8xf32> to vector<256x8xf32>
    %c0_3 = arith.constant 0 : index
    %c0_4 = arith.constant 0 : index
    %9 = vector.load %arg6[%c0_3, %c0_4] : memref<256x128xf32, #tpu.memory_space<vmem>>, vector<256x8xf32>
    tpu.vector_store %arg6[%c0_3, %c0_4], %8 {strides = array<i32>} : memref<256x128xf32, #tpu.memory_space<vmem>>, vector<256x8xf32>,
    %10 = vector.extract_strided_slice %4 {offsets = [0, 1, 0], sizes = [16, 16, 8], strides = [1, 1, 1]} : vector<18x18x8xf32> to vector<16x16x8xf32>
    %11 = vector.shape_cast %10 : vector<16x16x8xf32> to vector<256x8xf32>
    %c0_5 = arith.constant 0 : index
    %c8 = arith.constant 8 : index
    %12 = vector.load %arg6[%c0_5, %c8] : memref<256x128xf32, #tpu.memory_space<vmem>>, vector<256x8xf32>
    tpu.vector_store %arg6[%c0_5, %c8], %11 {strides = array<i32>} : memref<256x128xf32, #tpu.memory_space<vmem>>, vector<256x8xf32>,
    %13 = vector.extract_strided_slice %4 {offsets = [0, 2, 0], sizes = [16, 16, 8], strides = [1, 1, 1]} : vector<18x18x8xf32> to vector<16x16x8xf32>
    %14 = vector.shape_cast %13 : vector<16x16x8xf32> to vector<256x8xf32>
    %c0_6 = arith.constant 0 : index
    %c16 = arith.constant 16 : index
    %15 = vector.load %arg6[%c0_6, %c16] : memref<256x128xf32, #tpu.memory_space<vmem>>, vector<256x8xf32>
    tpu.vector_store %arg6[%c0_6, %c16], %14 {strides = array<i32>} : memref<256x128xf32, #tpu.memory_space<vmem>>, vector<256x8xf32>,
    %16 = vector.extract_strided_slice %4 {offsets = [1, 0, 0], sizes = [16, 16, 8], strides = [1, 1, 1]} : vector<18x18x8xf32> to vector<16x16x8xf32>
    %17 = vector.shape_cast %16 : vector<16x16x8xf32> to vector<256x8xf32>
    %c0_7 = arith.constant 0 : index
    %c24 = arith.constant 24 : index
    %18 = vector.load %arg6[%c0_7, %c24] : memref<256x128xf32, #tpu.memory_space<vmem>>, vector<256x8xf32>
    tpu.vector_store %arg6[%c0_7, %c24], %17 {strides = array<i32>} : memref<256x128xf32, #tpu.memory_space<vmem>>, vector<256x8xf32>,
    %19 = vector.extract_strided_slice %4 {offsets = [1, 1, 0], sizes = [16, 16, 8], strides = [1, 1, 1]} : vector<18x18x8xf32> to vector<16x16x8xf32>
    %20 = vector.shape_cast %19 : vector<16x16x8xf32> to vector<256x8xf32>
    %c0_8 = arith.constant 0 : index
    %c32 = arith.constant 32 : index
    %21 = vector.load %arg6[%c0_8, %c32] : memref<256x128xf32, #tpu.memory_space<vmem>>, vector<256x8xf32>
    tpu.vector_store %arg6[%c0_8, %c32], %20 {strides = array<i32>} : memref<256x128xf32, #tpu.memory_space<vmem>>, vector<256x8xf32>,
    %22 = vector.extract_strided_slice %4 {offsets = [1, 2, 0], sizes = [16, 16, 8], strides = [1, 1, 1]} : vector<18x18x8xf32> to vector<16x16x8xf32>
    %23 = vector.shape_cast %22 : vector<16x16x8xf32> to vector<256x8xf32>
    %c0_9 = arith.constant 0 : index
    %c40 = arith.constant 40 : index
    %24 = vector.load %arg6[%c0_9, %c40] : memref<256x128xf32, #tpu.memory_space<vmem>>, vector<256x8xf32>
    tpu.vector_store %arg6[%c0_9, %c40], %23 {strides = array<i32>} : memref<256x128xf32, #tpu.memory_space<vmem>>, vector<256x8xf32>,
    %25 = vector.extract_strided_slice %4 {offsets = [2, 0, 0], sizes = [16, 16, 8], strides = [1, 1, 1]} : vector<18x18x8xf32> to vector<16x16x8xf32>
    %26 = vector.shape_cast %25 : vector<16x16x8xf32> to vector<256x8xf32>
    %c0_10 = arith.constant 0 : index
    %c48 = arith.constant 48 : index
    %27 = vector.load %arg6[%c0_10, %c48] : memref<256x128xf32, #tpu.memory_space<vmem>>, vector<256x8xf32>
    tpu.vector_store %arg6[%c0_10, %c48], %26 {strides = array<i32>} : memref<256x128xf32, #tpu.memory_space<vmem>>, vector<256x8xf32>,
    %28 = vector.extract_strided_slice %4 {offsets = [2, 1, 0], sizes = [16, 16, 8], strides = [1, 1, 1]} : vector<18x18x8xf32> to vector<16x16x8xf32>
    %29 = vector.shape_cast %28 : vector<16x16x8xf32> to vector<256x8xf32>
    %c0_11 = arith.constant 0 : index
    %c56 = arith.constant 56 : index
    %30 = vector.load %arg6[%c0_11, %c56] : memref<256x128xf32, #tpu.memory_space<vmem>>, vector<256x8xf32>
    tpu.vector_store %arg6[%c0_11, %c56], %29 {strides = array<i32>} : memref<256x128xf32, #tpu.memory_space<vmem>>, vector<256x8xf32>,
    %31 = vector.extract_strided_slice %4 {offsets = [2, 2, 0], sizes = [16, 16, 8], strides = [1, 1, 1]} : vector<18x18x8xf32> to vector<16x16x8xf32>
    %32 = vector.shape_cast %31 : vector<16x16x8xf32> to vector<256x8xf32>
    %c0_12 = arith.constant 0 : index
    %c64 = arith.constant 64 : index
    %33 = vector.load %arg6[%c0_12, %c64] : memref<256x128xf32, #tpu.memory_space<vmem>>, vector<256x8xf32>
    tpu.vector_store %arg6[%c0_12, %c64], %32 {strides = array<i32>} : memref<256x128xf32, #tpu.memory_space<vmem>>, vector<256x8xf32>,
    %c0_13 = arith.constant 0 : index
    %c0_14 = arith.constant 0 : index
    %34 = vector.load %arg3[%c0_13, %c0_14] : memref<16x128xf32, #tpu.memory_space<vmem>>, vector<16x128xf32>
    %c0_15 = arith.constant 0 : index
    %c0_16 = arith.constant 0 : index
    %35 = vector.load %arg6[%c0_15, %c0_16] : memref<256x128xf32, #tpu.memory_space<vmem>>, vector<256x128xf32>
    %cst_17 = arith.constant dense<0.000000e+00> : vector<16x256xf32>
    %36 = tpu.matmul %34, %35, %cst_17 {dimension_numbers = #tpu.dot_dimension_numbers<[1], [1], [0], [0], [0, 0, 1, 0], [], []>} : vector<16x128xf32>, vector<256x128xf32>, vector<16x256xf32> -> vector<16x256xf32>
    %c0_18 = arith.constant 0 : index
    %c0_19 = arith.constant 0 : index
    %37 = vector.load %arg4[%c0_18, %c0_19] : memref<16x1xf32, #tpu.memory_space<vmem>>, vector<16x1xf32>
    %38 = vector.broadcast %37 : vector<16x1xf32> to vector<16x256xf32>
    %39 = arith.addf %36, %38 : vector<16x256xf32>
    %c0_20 = arith.constant 0 : index
    %c0_21 = arith.constant 0 : index
    %c0_22 = arith.constant 0 : index
    %40 = vector.load %arg5[%c0_20, %c0_21, %c0_22] : memref<1x16x256xf32, #tpu.memory_space<vmem>>, vector<1x16x256xf32>
    %41 = vector.shape_cast %40 : vector<1x16x256xf32> to vector<16x256xf32>
    %42 = vector.shape_cast %39 : vector<16x256xf32> to vector<1x16x256xf32>
    tpu.vector_store %arg5[%c0_20, %c0_21, %c0_22], %42 {strides = array<i32>} : memref<1x16x256xf32, #tpu.memory_space<vmem>>, vector<1x16x256xf32>,
    return
  }
  func.func @transform_0(%arg0: i32, %arg1: i32) -> (i32, i32, i32, i32) {
    %c0_i32 = arith.constant 0 : i32
    %c0_i32_0 = arith.constant 0 : i32
    %c0_i32_1 = arith.constant 0 : i32
    %c0_i32_2 = arith.constant 0 : i32
    return %arg0, %c0_i32, %c0_i32_0, %c0_i32_1 : i32, i32, i32, i32
  }
  func.func @transform_1(%arg0: i32, %arg1: i32) -> (i32, i32) {
    %c0_i32 = arith.constant 0 : i32
    %c0_i32_0 = arith.constant 0 : i32
    %c0_i32_1 = arith.constant 0 : i32
    return %c0_i32, %c0_i32_0 : i32, i32
  }
  func.func @transform_2(%arg0: i32, %arg1: i32) -> (i32, i32) {
    %c0_i32 = arith.constant 0 : i32
    %c0_i32_0 = arith.constant 0 : i32
    %c0_i32_1 = arith.constant 0 : i32
    return %c0_i32, %c0_i32_0 : i32, i32
  }
  func.func @transform_3(%arg0: i32, %arg1: i32) -> (i32, i32, i32) {
    %c0_i32 = arith.constant 0 : i32
    %c0_i32_0 = arith.constant 0 : i32
    return %arg0, %c0_i32, %arg1 : i32, i32, i32
  }
}

</mosaic_0001>

<bundles_post_ra>
// kernel: tpu_custom_call.1
= control target key start
LH: loop header
LB: loop body
LE: loop exit
PB: predicated region body
PF: predicated region fallthrough
CT: control target
= control target key end

     0   :  { %8 = vsyncpa [#allocation4], 0  ;;  %s3497_s0 = inlined_call_operand.vmem [shape: f32[2,18,18,8], index: 0, kind: input, shape index: {}]   ;;  %s3498_s1 = inlined_call_operand.vmem [shape: f32[16,128], index: 1, kind: input, shape index: {}]   ;;  %s3499_s2 = inlined_call_operand.vmem [shape: f32[16,1], index: 2, kind: input, shape index: {}]   ;;  %s3500_s3 = inlined_call_operand.hbm [shape: f32[2,16,256], index: 3, kind: output, shape index: {}]  }
   0x1   :  { %10 = vsyncpa [#allocation4 + $0x1], 0  ;;  %s2071_s12 = smov 0   ;;  %s2073_s13 = smov 0  }
   0x2   :  { %s2075_s14 = smov 0   ;;  %s2077_s15 = smov 0  }
   0x3   :  { %s2079_s16 = smov 0   ;;  %s2081_s17 = smov 0  }
   0x4 LB: > { %s1793_s18 = sadd.s32 4294967295, %s2037_s17   ;;  %s1794_s19 = sadd.s32 4294967294, %s2037_s17   ;;  %s2037_s17 = sphi %s2081_s17, %s16_s17   ;;  %s2033_s16 = sphi %s2079_s16, %s3639_s16   ;;  %s2029_s15 = sphi %s2077_s15, %s3638_s15   ;;  %s2025_s14 = sphi %s2075_s14, %s3637_s14   ;;  %s2021_s13 = sphi %s2073_s13, %s3636_s13   ;;  %s2017_s12 = sphi %s2071_s12, %s3635_s12  }
   0x5   : > { %s28_s20 = sadd.s32 1, %s2033_s16  ;;  %s105_s21 = sadd.s32 1, %s2025_s14 }
   0x6   : > { %p30_p0 = scmp.ge.s32.totalorder %s28_s20, 2  ;;  %p115_p1 = scmp.ne.s32.totalorder %s2025_s14, %s2021_s13 }
   0x7   : > { %p116_p2 = scmp.eq.s32.totalorder %s1793_s18, 1  ;;  %p121_p3 = scmp.ne.s32.totalorder %s2021_s13, %s2017_s12 }
   0x8   : > { %s3641_s20 = smov (%p30_p0, %s28_s20), 0  ;;  %p122_p5 = scmp.eq.s32.totalorder %s1794_s19, 1 }
   0x9   : > { %p2111_p4 = por %p116_p2, %p115_p1  ;;  %s100_s23 = ssub.s32 %s2033_s16, %s3641_s20 }
   0xa   : > { %p1797_p6 = scmp.ge.s32.totalorder %s2037_s17, 1  ;;  %p103_p7 = scmp.eq.s32.totalorder %s100_s23, 0 }
   0xb   : > { %p2118_p8 = por %p122_p5, %p121_p3  ;;  %p154_p9 = scmp.lt.s32.totalorder %s2037_s17, 3 }
   0xc   : > { %s2124_s25 = scalar_select %p103_p7, %s2025_s14, %s105_s21  }
   0xd   : > { %p155_p10 = pnand %p1797_p6, %p154_p9 }
   0xf   : > { %158 = sbr.rel (%p155_p10) target bundleno = 904 (0x388), region = 32 }
  0x16   : > { %p178_p11 = scmp.lt.s32.totalorder %s2029_s15, 1  ;;  %vm241_vm0 = vcmask 1048128   ;;  %v2039_v0 = vmov 0.0   ;;  %vm274_vm1 = vcmask 64512   ;;  %vm355_vm2 = vcmask 1046528   ;;  %s2040_s4 = smov 8  }
  0x17   : > { %244 = vst.msk [vmem:[#allocation2 + $0x10] sm:$0xff] %vm241_vm0, %v2039_v0  ;;  %242 = vst.msk [vmem:[#allocation2] sm:$0xff] %vm241_vm0, %v2039_v0  ;;  %vm565_vm3 = vcmask 1045504   ;;  %s2041_s5 = smov 16   ;;  %vm532_vm4 = vcmask 130112   ;;  %s2042_s6 = smov 24  }
  0x18   : > { %243 = vst.msk [vmem:[#allocation2 + $0x8] sm:$0xff] %vm241_vm0, %v2039_v0  ;;  %245 = vst.msk [vmem:[#allocation2 + $0x18] sm:$0xff] %vm241_vm0, %v2039_v0  ;;  %s179_s26 = scalar_select %p178_p11, %s2029_s15, 1  ;;  %vm742_vm5 = vcmask 195712   ;;  %vm873_vm6 = vcmask 261312   ;;  %vm1008_vm7 = vcmask 326912  }
  0x19   : > { %246 = vst.msk [vmem:[#allocation2 + $0x20] sm:$0xff] %vm241_vm0, %v2039_v0  ;;  %247 = vst.msk [vmem:[#allocation2 + $0x28] sm:$0xff] %vm241_vm0, %v2039_v0  ;;  %s2043_s7 = smov 32   ;;  %s2044_s8 = smov 40   ;;  %vm1142_vm8 = vcmask 392512   ;;  %vm1273_vm9 = vcmask 458112  }
  0x1a   : > { %248 = vst.msk [vmem:[#allocation2 + $0x30] sm:$0xff] %vm241_vm0, %v2039_v0  ;;  %249 = vst.msk [vmem:[#allocation2 + $0x38] sm:$0xff] %vm241_vm0, %v2039_v0  ;;  %s1890_s27 = smul.u32 432, %s179_s26  ;;  %s2045_s9 = smov 48   ;;  %vm1408_vm10 = vcmask 523712   ;;  %vm1542_vm11 = vcmask 589312  }
  0x1b   : > { %250 = vst.msk [vmem:[#allocation2 + $0x40] sm:$0xff] %vm241_vm0, %v2039_v0  ;;  %251 = vst.msk [vmem:[#allocation2 + $0x48] sm:$0xff] %vm241_vm0, %v2039_v0  ;;  %s2046_s10 = smov 56   ;;  %s2047_s11 = smov 64  }
  0x1c   : > { %252 = vst.msk [vmem:[#allocation2 + $0x50] sm:$0xff] %vm241_vm0, %v2039_v0  ;;  %253 = vst.msk [vmem:[#allocation2 + $0x58] sm:$0xff] %vm241_vm0, %v2039_v0  ;;  %s2165_s30 = scalar_lea.vmem %s3497_s0, %s1890_s27  ;;  %s2049_s19 = smov [#allocation3]  }
  0x1d   : > { %254 = vst.msk [vmem:[#allocation2 + $0x60] sm:$0xff] %vm241_vm0, %v2039_v0  ;;  %255 = vst.msk [vmem:[#allocation2 + $0x68] sm:$0xff] %vm241_vm0, %v2039_v0  ;;  %v2168_v1 = vld [vmem:[%s2165_s30 + $0x18] sm:$0xff]  ;;  %v2171_v2 = vld [vmem:[%s2165_s30 + $0x20] sm:$0xff]  ;;  %s1963_s21 = sshll.u32 %s2049_s19, 4  ;;  %s1964_s21 = int_to_ptr.vmem [resolvable:$false] %s1963_s21 }
  0x1e   : > { %256 = vst.msk [vmem:[#allocation2 + $0x70] sm:$0xff] %vm241_vm0, %v2039_v0  ;;  %257 = vst.msk [vmem:[#allocation2 + $0x78] sm:$0xff] %vm241_vm0, %v2039_v0  ;;  %v2174_v3 = vld [vmem:[%s2165_s30] sm:$0xff]  ;;  %v361_v4 = vrot.slane %v2168_v1, 1  ;;  %v362_v5 = vrot.slane %v2171_v2, 1  ;;  %v2179_v6 = vld [vmem:[%s2165_s30 + $0x8] sm:$0xff] }
  0x1f   : > { %258 = vst.msk [vmem:[#allocation2 + $0x80] sm:$0xff] %vm241_vm0, %v2039_v0  ;;  %259 = vst.msk [vmem:[#allocation2 + $0x88] sm:$0xff] %vm241_vm0, %v2039_v0  ;;  %v356_v7 = vrot.slane %v2174_v3, 1  ;;  %v2183_v8 = vld [vmem:[%s2165_s30 + $0x28] sm:$0x3]  ;;  %v357_v9 = vrot.slane %v2179_v6, 1 }
  0x20   : > { %260 = vst.msk [vmem:[#allocation2 + $0x90] sm:$0xff] %vm241_vm0, %v2039_v0  ;;  %261 = vst.msk [vmem:[#allocation2 + $0x98] sm:$0xff] %vm241_vm0, %v2039_v0  ;;  %v364_v10 = vrot.slane %v2183_v8, 1  ;;  %v2194_v11 = vld [vmem:[%s2165_s30 + $0x10] sm:$0x3]  ;;  %v2197_v12 = vld [vmem:[%s2165_s30 + $0x38] sm:$0xff]  ;;  %v2205_v14 = vsel %vm355_vm2, %v361_v4, %v362_v5 }
  0x21   : > { %262 = vst.msk [vmem:[#allocation2 + $0xa0] sm:$0xff] %vm241_vm0, %v2039_v0  ;;  %263 = vst.msk [vmem:[#allocation2 + $0xa8] sm:$0xff] %vm241_vm0, %v2039_v0  ;;  %v2200_v13 = vld [vmem:[%s2165_s30 + $0x30] sm:$0xff]  ;;  %v359_v15 = vrot.slane %v2194_v11, 1  ;;  %v2209_v16 = vld [vmem:[%s2165_s30 + $0x40] sm:$0x3]  ;;  %440 = vrot.lane.b32.xlu1 %v2205_v14, %s2040_s4  ;;  %v358_v18 = vsel %vm355_vm2, %v356_v7, %v357_v9 }
  0x22   : > { %264 = vst.msk [vmem:[#allocation2 + $0xb0] sm:$0xff] %vm241_vm0, %v2039_v0  ;;  %265 = vst.msk [vmem:[#allocation2 + $0xb8] sm:$0xff] %vm241_vm0, %v2039_v0  ;;  %v2212_v17 = vld [vmem:[%s2165_s30 + $0x50] sm:$0xff]  ;;  %v2222_v19 = vld [vmem:[%s2165_s30 + $0x48] sm:$0xff]  ;;  %436 = vrot.lane.b32.xlu0 %v358_v18, %s2040_s4  ;;  %v2231_v21 = vsel %vm355_vm2, %v362_v5, %v364_v10  ;;  %v367_v22 = vrot.slane %v2197_v12, 1  ;;  %v369_v23 = vrot.slane %v2209_v16, 1 }
  0x23   : > { %266 = vst.msk [vmem:[#allocation2 + $0xc0] sm:$0xff] %vm241_vm0, %v2039_v0  ;;  %267 = vst.msk [vmem:[#allocation2 + $0xc8] sm:$0xff] %vm241_vm0, %v2039_v0  ;;  %v2225_v20 = vld [vmem:[%s2165_s30 + $0x68] sm:$0xff]  ;;  %v2236_v24 = vld [vmem:[%s2165_s30 + $0x60] sm:$0xff]  ;;  %v360_v26 = vsel %vm355_vm2, %v357_v9, %v359_v15  ;;  %v366_v27 = vrot.slane %v2200_v13, 1  ;;  %v372_v35 = vrot.slane %v2212_v17, 1 }
  0x24   : > { %268 = vst.msk [vmem:[#allocation2 + $0xd0] sm:$0xff] %vm241_vm0, %v2039_v0  ;;  %269 = vst.msk [vmem:[#allocation2 + $0xd8] sm:$0xff] %vm241_vm0, %v2039_v0  ;;  %v2239_v25 = vld [vmem:[%s2165_s30 + $0x80] sm:$0xff]  ;;  %v2248_v28 = vld [vmem:[%s2165_s30 + $0x58] sm:$0x3]  ;;  %v2279_v34 = vsel %vm355_vm2, %v367_v22, %v369_v23  ;;  %v371_v40 = vrot.slane %v2222_v19, 1 }
  0x25   : > { %270 = vst.msk [vmem:[#allocation2 + $0xe0] sm:$0xff] %vm241_vm0, %v2039_v0  ;;  %271 = vst.msk [vmem:[#allocation2 + $0xe8] sm:$0xff] %vm241_vm0, %v2039_v0  ;;  %v2251_v29 = vld [vmem:[%s2165_s30 + $0x78] sm:$0xff]  ;;  %v2261_v31 = vld [vmem:[%s2165_s30 + $0x90] sm:$0xff]  ;;  %442 = vrot.lane.b32.xlu1 %v2231_v21, %s2040_s4  ;;  %v374_v36 = vrot.slane %v2248_v28, 1  ;;  %v2294_v39 = vsel %vm355_vm2, %v366_v27, %v367_v22  ;;  %v377_v49 = vrot.slane %v2225_v20, 1 }
  0x26   : > { %272 = vst.msk [vmem:[#allocation2 + $0xf0] sm:$0xff] %vm241_vm0, %v2039_v0  ;;  %273 = vst.msk [vmem:[#allocation2 + $0xf8] sm:$0xff] %vm241_vm0, %v2039_v0  ;;  %v2258_v30 = vld [vmem:[%s2165_s30 + $0x98] sm:$0xff]  ;;  %v2268_v32 = vld [vmem:[%s2165_s30 + $0xb0] sm:$0xff]  ;;  %438 = vrot.lane.b32.xlu0 %v360_v26, %s2040_s4  ;;  %v2350_v53 = vsel %vm355_vm2, %v371_v40, %v372_v35  ;;  %v376_v54 = vrot.slane %v2236_v24, 1  ;;  %v382_v61 = vrot.slane %v2239_v25, 1 }
  0x27   : > { %277 = vst.msk [vmem:[#allocation2 + $0x10] sm:$0xff] %vm274_vm1, %v2168_v1  ;;  %275 = vst.msk [vmem:[#allocation2] sm:$0xff] %vm274_vm1, %v2174_v3  ;;  %v2271_v33 = vld [vmem:[%s2165_s30 + $0xa8] sm:$0xff]  ;;  %v2284_v37 = vld [vmem:[%s2165_s30 + $0x70] sm:$0x3]  ;;  %v2335_v48 = vsel %vm355_vm2, %v372_v35, %v374_v36  ;;  %v381_v5 = vrot.slane %v2251_v29, 1 }
  0x28   : > { %278 = vst.msk [vmem:[#allocation2 + $0x18] sm:$0xff] %vm274_vm1, %v2171_v2  ;;  %276 = vst.msk [vmem:[#allocation2 + $0x8] sm:$0xff] %vm274_vm1, %v2179_v6  ;;  %v2287_v38 = vld [vmem:[%s2165_s30 + $0xc8] sm:$0xff]  ;;  %v2298_v41 = vld [vmem:[%s2165_s30 + $0xc0] sm:$0xff]  ;;  %v379_v50 = vrot.slane %v2284_v37, 1  ;;  %v2396_v4 = vsel %vm355_vm2, %v376_v54, %v377_v49  ;;  %v387_v10 = vrot.slane %v2258_v30, 1 }
  0x29   : > { %279 = vst.msk [vmem:[#allocation2 + $0x20] sm:$0xff] %vm274_vm1, %v2200_v13  ;;  %280 = vst.msk [vmem:[#allocation2 + $0x28] sm:$0xff] %vm274_vm1, %v2197_v12  ;;  %v2301_v42 = vld [vmem:[%s2165_s30 + $0xe0] sm:$0xff]  ;;  %v2304_v43 = vld [vmem:[%s2165_s30 + $0xd8] sm:$0xff]  ;;  %446 = vrot.lane.b32.xlu1 %v2279_v34, %s2040_s4  ;;  %v2416_v18 = vsel %vm355_vm2, %v381_v5, %v382_v61  ;;  %v386_v22 = vrot.slane %v2261_v31, 1  ;;  %v392_v27 = vrot.slane %v2268_v32, 1 }
  0x2a   : > { %282 = vst.msk [vmem:[#allocation2 + $0x38] sm:$0xff] %vm274_vm1, %v2212_v17  ;;  %281 = vst.msk [vmem:[#allocation2 + $0x30] sm:$0xff] %vm274_vm1, %v2222_v19  ;;  %v2309_v44 = vld [vmem:[%s2165_s30 + $0xf8] sm:$0xff]  ;;  %v2312_v45 = vld [vmem:[%s2165_s30 + $0xf0] sm:$0xff]  ;;  %444 = vrot.lane.b32.xlu0 %v2294_v39, %s2040_s4  ;;  %v2381_v60 = vsel %vm355_vm2, %v377_v49, %v379_v50  ;;  %v391_v40 = vrot.slane %v2271_v33, 1  ;;  %v397_v54 = vrot.slane %v2287_v38, 1 }
  0x2b   : > { %284 = vst.msk [vmem:[#allocation2 + $0x48] sm:$0xff] %vm274_vm1, %v2225_v20  ;;  %283 = vst.msk [vmem:[#allocation2 + $0x40] sm:$0xff] %vm274_vm1, %v2236_v24  ;;  %v2323_v46 = vld [vmem:[%s2165_s30 + $0x110] sm:$0xff]  ;;  %v2326_v47 = vld [vmem:[%s2165_s30 + $0x108] sm:$0xff]  ;;  %v2432_v36 = vsel %vm355_vm2, %v386_v22, %v387_v10  ;;  %v396_v5 = vrot.slane %v2298_v41, 1  ;;  %v402_v22 = vrot.slane %v2301_v42, 1 }
  0x2c   : > { %286 = vst.msk [vmem:[#allocation2 + $0x58] sm:$0xff] %vm274_vm1, %v2239_v25  ;;  %285 = vst.msk [vmem:[#allocation2 + $0x50] sm:$0xff] %vm274_vm1, %v2251_v29  ;;  %v2340_v51 = vld [vmem:[%s2165_s30 + $0x128] sm:$0xff]  ;;  %v2343_v52 = vld [vmem:[%s2165_s30 + $0x120] sm:$0xff]  ;;  %s1965_s23 = scalar_lea.vmem %s1964_s21, 1024 }
  0x2d   : > { %287 = vst.msk [vmem:[#allocation2 + $0x60] sm:$0xff] %vm274_vm1, %v2261_v31  ;;  %288 = vst.msk [vmem:[#allocation2 + $0x68] sm:$0xff] %vm274_vm1, %v2258_v30  ;;  %v2354_v55 = vld [vmem:[%s2165_s30 + $0x88] sm:$0x3]  ;;  %v2357_v56 = vld [vmem:[%s2165_s30 + $0x140] sm:$0xff]  ;;  %450 = vrot.lane.b32.xlu1 %v2335_v48, %s2040_s4 }
  0x2e   : > { %3569 = vst [vmem:[#allocation6_spill] sm:$0xff] %v2279_v34  ;;  %289 = vst.msk [vmem:[#allocation2 + $0x70] sm:$0xff] %vm274_vm1, %v2271_v33  ;;  %v2364_v57 = vld [vmem:[%s2165_s30 + $0x138] sm:$0xff]  ;;  %v2374_v59 = vld [vmem:[%s2165_s30 + $0x150] sm:$0xff]  ;;  %448 = vrot.lane.b32.xlu0 %v2350_v53, %s2040_s4  ;;  %v384_v62 = vrot.slane %v2354_v55, 1 }
  0x2f   : > { %290 = vst.msk [vmem:[#allocation2 + $0x78] sm:$0xff] %vm274_vm1, %v2268_v32  ;;  %3570 = vst [vmem:[#allocation7_spill] sm:$0xff] %v2294_v39  ;;  %v2371_v58 = vld [vmem:[%s2165_s30 + $0x158] sm:$0xff]  ;;  %v2386_v63 = vld [vmem:[%s2165_s30 + $0x170] sm:$0xff] }
  0x30   : > { %292 = vst.msk [vmem:[#allocation2 + $0x88] sm:$0xff] %vm274_vm1, %v2287_v38  ;;  %291 = vst.msk [vmem:[#allocation2 + $0x80] sm:$0xff] %vm274_vm1, %v2298_v41  ;;  %v2389_v0 = vld [vmem:[%s2165_s30 + $0x168] sm:$0xff]  ;;  %v2400_v7 = vld [vmem:[%s2165_s30 + $0xa0] sm:$0x3]  ;;  %v2411_v9 = vsel %vm355_vm2, %v382_v61, %v384_v62  ;;  %v2448_v62 = vsel %vm355_vm2, %v391_v40, %v392_v27  ;;  %v401_v40 = vrot.slane %v2304_v43, 1 }
  0x31   : > { %293 = vst.msk [vmem:[#allocation2 + $0x90] sm:$0xff] %vm274_vm1, %v2304_v43  ;;  %294 = vst.msk [vmem:[#allocation2 + $0x98] sm:$0xff] %vm274_vm1, %v2301_v42  ;;  %454 = vrot.lane.b32.xlu1 %v2381_v60, %s2040_s4  ;;  %v389_v15 = vrot.slane %v2400_v7, 1  ;;  %v2420_v23 = vld [vmem:[%s2165_s30 + $0xb8] sm:$0x3] }
  0x32   : > { %295 = vst.msk [vmem:[#allocation2 + $0xa0] sm:$0xff] %vm274_vm1, %v2312_v45  ;;  %296 = vst.msk [vmem:[#allocation2 + $0xa8] sm:$0xff] %vm274_vm1, %v2309_v44  ;;  %452 = vrot.lane.b32.xlu0 %v2396_v4, %s2040_s4  ;;  %v394_v35 = vrot.slane %v2420_v23, 1  ;;  %v2436_v49 = vld [vmem:[%s2165_s30 + $0xd0] sm:$0x3] }
  0x33   : > { %3571 = vst [vmem:[#allocation8_spill] sm:$0xff] %v2335_v48  ;;  %297 = vst.msk [vmem:[#allocation2 + $0xb0] sm:$0xff] %vm274_vm1, %v2326_v47  ;;  %v2427_v26 = vsel %vm355_vm2, %v387_v10, %v389_v15  ;;  %v399_v61 = vrot.slane %v2436_v49, 1  ;;  %v2452_v10 = vld [vmem:[%s2165_s30 + $0xe8] sm:$0x3] }
  0x34   : > { %298 = vst.msk [vmem:[#allocation2 + $0xb8] sm:$0xff] %vm274_vm1, %v2323_v46  ;;  %3572 = vst [vmem:[#allocation9_spill] sm:$0xff] %v2350_v53  ;;  %v2443_v50 = vsel %vm355_vm2, %v392_v27, %v394_v35  ;;  %v404_v35 = vrot.slane %v2452_v10, 1  ;;  %v2464_v27 = vsel %vm355_vm2, %v396_v5, %v397_v54  ;;  %v406_v5 = vrot.slane %v2312_v45, 1  ;;  %v2532_v39 = vld [vmem:[%s2165_s30 + $0x160] sm:$0x3] }
  0x35   : > { %299 = vst.msk [vmem:[#allocation2 + $0xc0] sm:$0xff] %vm274_vm1, %v2343_v52  ;;  %300 = vst.msk [vmem:[#allocation2 + $0xc8] sm:$0xff] %vm274_vm1, %v2340_v51  ;;  %458 = vrot.lane.b32.xlu1 %v2411_v9, %s2040_s4  ;;  %v2459_v15 = vsel %vm355_vm2, %v397_v54, %v399_v61  ;;  %v2480_v54 = vsel %vm355_vm2, %v401_v40, %v402_v22  ;;  %v411_v40 = vrot.slane %v2326_v47, 1  ;;  %v422_v53 = vrot.slane %v2357_v56, 1  ;;  %v2548_v34 = vld [vmem:[%s2165_s30 + $0x178] sm:$0x3] }
  0x36   : > { %302 = vst.msk [vmem:[#allocation2 + $0xd8] sm:$0xff] %vm274_vm1, %v2357_v56  ;;  %3573 = vst [vmem:[#allocation10_spill] sm:$0xff] %v2374_v59  ;;  %456 = vrot.lane.b32.xlu0 %v2416_v18, %s2040_s4  ;;  %v2475_v61 = vsel %vm355_vm2, %v402_v22, %v404_v35 }
  0x37   : > { %301 = vst.msk [vmem:[#allocation2 + $0xd0] sm:$0xff] %vm274_vm1, %v2364_v57  ;;  %3574 = vst [vmem:[#allocation11_spill] sm:$0xff] %v2381_v60  ;;  %v2516_v60 = vld [vmem:[%s2165_s30 + $0x148] sm:$0x3] }
  0x38   : > { %303 = vst.msk [vmem:[#allocation2 + $0xe0] sm:$0xff] %vm274_vm1, %v2374_v59  ;;  %304 = vst.msk [vmem:[#allocation2 + $0xe8] sm:$0xff] %vm274_vm1, %v2371_v58  ;;  %v424_v48 = vrot.slane %v2516_v60, 1 }
  0x39   : > { %3575 = vst [vmem:[#allocation12_spill] sm:$0xff] %v2396_v4  ;;  %305 = vst.msk [vmem:[#allocation2 + $0xf0] sm:$0xff] %vm274_vm1, %v2389_v0  ;;  %462 = vrot.lane.b32.xlu1 %v2427_v26, %s2040_s4 }
  0x3a   : > { %306 = vst.msk [vmem:[#allocation2 + $0xf8] sm:$0xff] %vm274_vm1, %v2386_v63  ;;  %3576 = vst [vmem:[#allocation13_spill] sm:$0xff] %v2411_v9  ;;  %460 = vrot.lane.b32.xlu0 %v2432_v36, %s2040_s4  ;;  %v417_v9 = vrot.slane %v2340_v51, 1 }
  0x3b   : > { %3577 = vst [vmem:[#allocation14_spill] sm:$0xff] %v2416_v18  ;;  %3578 = vst [vmem:[#allocation15_spill] sm:$0xff] %v2427_v26  ;;  %v2484_v26 = vld [vmem:[%s2165_s30 + $0x118] sm:$0x3]  ;;  %v2500_v18 = vld [vmem:[%s2165_s30 + $0x130] sm:$0x3] }
  0x3c   : > { %3579 = vst [vmem:[#allocation16_spill] sm:$0xff] %v2432_v36  ;;  %3580 = vst [vmem:[#allocation17_spill] sm:$0xff] %v2443_v50  ;;  %v2468_v36 = vld [vmem:[%s2165_s30 + $0x100] sm:$0x3]  ;;  %v419_v4 = vrot.slane %v2500_v18, 1 }
  0x3d   : > { %3581 = vst [vmem:[#allocation18_spill] sm:$0xff] %v2448_v62  ;;  %466 = vrot.lane.b32.xlu1 %v2443_v50, %s2040_s4  ;;  %3582 = vst [vmem:[#allocation19_spill] sm:$0xff] %v2459_v15  ;;  %v409_v50 = vrot.slane %v2468_v36, 1 }
  0x3e   : > { %464 = vrot.lane.b32.xlu0 %v2448_v62, %s2040_s4  ;;  %3583 = vst [vmem:[#allocation20_spill] sm:$0xff] %v2464_v27  ;;  %v407_v62 = vrot.slane %v2309_v44, 1 }
  0x40   : > { %v2491_v35 = vsel %vm355_vm2, %v407_v62, %v409_v50  ;;  %v2496_v22 = vsel %vm355_vm2, %v406_v5, %v407_v62  ;;  %v416_v5 = vrot.slane %v2343_v52, 1 }
  0x41   : > { %470 = vrot.lane.b32.xlu1 %v2459_v15, %s2040_s4  ;;  %v414_v15 = vrot.slane %v2484_v26, 1  ;;  %3584 = vst [vmem:[#allocation21_spill] sm:$0xff] %v2496_v22 }
  0x42   : > { %468 = vrot.lane.b32.xlu0 %v2464_v27, %s2040_s4  ;;  %v412_v27 = vrot.slane %v2323_v46, 1 }
  0x44   : > { %v2507_v50 = vsel %vm355_vm2, %v412_v27, %v414_v15  ;;  %v2512_v62 = vsel %vm355_vm2, %v411_v40, %v412_v27  ;;  %v2523_v15 = vsel %vm355_vm2, %v417_v9, %v419_v4  ;;  %v2528_v27 = vsel %vm355_vm2, %v416_v5, %v417_v9 }
  0x45   : > { %474 = vrot.lane.b32.xlu1 %v2475_v61, %s2040_s4  ;;  %3585 = vst [vmem:[#allocation22_spill] sm:$0xff] %v2507_v50  ;;  %3586 = vst [vmem:[#allocation23_spill] sm:$0xff] %v2512_v62  ;;  %v421_v40 = vrot.slane %v2364_v57, 1  ;;  %v2539_v4 = vsel %vm355_vm2, %v422_v53, %v424_v48  ;;  %v426_v5 = vrot.slane %v2374_v59, 1 }
  0x46   : > { %472 = vrot.lane.b32.xlu0 %v2480_v54, %s2040_s4  ;;  %3587 = vst [vmem:[#allocation24_spill] sm:$0xff] %v2523_v15  ;;  %3588 = vst [vmem:[#allocation25_spill] sm:$0xff] %v2528_v27 }
  0x47   : > { %3589 = vst [vmem:[#allocation26_spill] sm:$0xff] %v2539_v4  ;;  %v2544_v9 = vsel %vm355_vm2, %v421_v40, %v422_v53  ;;  %v431_v40 = vrot.slane %v2389_v0, 1 }
  0x48   : > { %3590 = vst [vmem:[#allocation27_spill] sm:$0xff] %v2544_v9 }
  0x49   : > { %478 = vrot.lane.b32.xlu1 %v2491_v35, %s2040_s4 }
  0x4a   : > { %476 = vrot.lane.b32.xlu0 %v2496_v22, %s2040_s4 }
  0x4d   : > { %482 = vrot.lane.b32.xlu1 %v2507_v50, %s2040_s4  ;;  %v429_v50 = vrot.slane %v2532_v39, 1 }
  0x4e   : > { %480 = vrot.lane.b32.xlu0 %v2512_v62, %s2040_s4  ;;  %v427_v62 = vrot.slane %v2371_v58, 1 }
  0x50   : > { %v2555_v48 = vsel %vm355_vm2, %v427_v62, %v429_v50  ;;  %v2560_v53 = vsel %vm355_vm2, %v426_v5, %v427_v62  ;;  %v567_v50 = vrot.slane %v2179_v6, 2  ;;  %v566_v62 = vrot.slane %v2174_v3, 2 }
  0x51   : > { %486 = vrot.lane.b32.xlu1 %v2523_v15, %s2040_s4  ;;  %3591 = vst [vmem:[#allocation28_spill] sm:$0xff] %v2555_v48  ;;  %v434_v15 = vrot.slane %v2548_v34, 1  ;;  %3592 = vst [vmem:[#allocation29_spill] sm:$0xff] %v2560_v53  ;;  %v574_v6 = vrot.slane %v2183_v8, 2  ;;  %v576_v8 = vrot.slane %v2200_v13, 2 }
  0x52   : > { %484 = vrot.lane.b32.xlu0 %v2528_v27, %s2040_s4  ;;  %v432_v27 = vrot.slane %v2386_v63, 1 }
  0x54   : > { %v2573_v22 = vsel %vm355_vm2, %v431_v40, %v432_v27  ;;  %v577_v40 = vrot.slane %v2197_v12, 2 }
  0x55   : > { %490 = vrot.lane.b32.xlu1 %v2539_v4, %s2040_s4  ;;  %v569_v4 = vrot.slane %v2194_v11, 2  ;;  %3594 = vst [vmem:[#allocation31_spill] sm:$0xff] %v2573_v22  ;;  %v568_v11 = vsel %vm565_vm3, %v566_v62, %v567_v50  ;;  %v582_v62 = vrot.slane %v2212_v17, 2 }
  0x56   : > { %488 = vrot.lane.b32.xlu0 %v2544_v9, %s2040_s4  ;;  %v2568_v9 = vsel %vm355_vm2, %v432_v27, %v434_v15  ;;  %v572_v15 = vrot.slane %v2171_v2, 2  ;;  %v571_v27 = vrot.slane %v2168_v1, 2 }
  0x57   : > { %3593 = vst [vmem:[#allocation30_spill] sm:$0xff] %v2568_v9  ;;  %v570_v5 = vsel %vm565_vm3, %v567_v50, %v569_v4  ;;  %v579_v4 = vrot.slane %v2209_v16, 2  ;;  %v2606_v16 = vsel %vm565_vm3, %v576_v8, %v577_v40  ;;  %v592_v8 = vrot.slane %v2239_v25, 2 }
  0x58   : > { %v2588_v3 = vsel %vm565_vm3, %v572_v15, %v574_v6 }
  0x59   : > { %494 = vrot.lane.b32.xlu1 %v2555_v48, %s2040_s4  ;;  %v2601_v50 = vsel %vm565_vm3, %v577_v40, %v579_v4  ;;  %v586_v40 = vrot.slane %v2236_v24, 2  ;;  %v609_v48 = vrot.slane %v2436_v49, 2 }
  0x5a   : > { %492 = vrot.lane.b32.xlu0 %v2560_v53, %s2040_s4  ;;  %v604_v53 = vrot.slane %v2420_v23, 2 }
  0x5d   : > { %498 = vrot.lane.b32.xlu1 %v2568_v9, %s2040_s4  ;;  %v599_v9 = vrot.slane %v2400_v7, 2 }
  0x5e   : > { %496 = vrot.lane.b32.xlu0 %v2573_v22, %s2040_s4  ;;  %v2593_v22 = vsel %vm565_vm3, %v571_v27, %v572_v15  ;;  %v581_v15 = vrot.slane %v2222_v19, 2  ;;  %v589_v27 = vrot.slane %v2284_v37, 2 }
  0x61   : > { %648 = vrot.lane.b32.xlu1 %v570_v5, %s2041_s5  ;;  %v584_v5 = vrot.slane %v2248_v28, 2  ;;  %v2619_v28 = vsel %vm565_vm3, %v581_v15, %v582_v62 }
  0x62   : > { %646 = vrot.lane.b32.xlu0 %v568_v11, %s2041_s5  ;;  %v587_v11 = vrot.slane %v2225_v20, 2 }
  0x63   : > { %v2614_v6 = vsel %vm565_vm3, %v582_v62, %v584_v5  ;;  %v594_v5 = vrot.slane %v2354_v55, 2  ;;  %v591_v62 = vrot.slane %v2251_v29, 2 }
  0x64   : > { %v2627_v4 = vsel %vm565_vm3, %v587_v11, %v589_v27  ;;  %v2632_v37 = vsel %vm565_vm3, %v586_v40, %v587_v11  ;;  %v597_v27 = vrot.slane %v2258_v30, 2  ;;  %v596_v11 = vrot.slane %v2261_v31, 2 }
  0x65   : > { %652 = vrot.lane.b32.xlu1 %v2588_v3, %s2041_s5  ;;  %v2640_v15 = vsel %vm565_vm3, %v592_v8, %v594_v5  ;;  %v2645_v55 = vsel %vm565_vm3, %v591_v62, %v592_v8  ;;  %v602_v5 = vrot.slane %v2268_v32, 2  ;;  %v601_v8 = vrot.slane %v2271_v33, 2 }
  0x66   : > { %650 = vrot.lane.b32.xlu0 %v2593_v22, %s2041_s5  ;;  %3595 = vst [vmem:[#allocation32_spill] sm:$0xff] %v2645_v55  ;;  %v2653_v40 = vsel %vm565_vm3, %v597_v27, %v599_v9  ;;  %v2658_v7 = vsel %vm565_vm3, %v596_v11, %v597_v27  ;;  %v607_v9 = vrot.slane %v2287_v38, 2  ;;  %v606_v27 = vrot.slane %v2298_v41, 2 }
  0x67   : > { %3596 = vst [vmem:[#allocation33_spill] sm:$0xff] %v2653_v40  ;;  %3597 = vst [vmem:[#allocation34_spill] sm:$0xff] %v2658_v7  ;;  %v2666_v62 = vsel %vm565_vm3, %v602_v5, %v604_v53  ;;  %v2671_v23 = vsel %vm565_vm3, %v601_v8, %v602_v5  ;;  %v612_v53 = vrot.slane %v2301_v42, 2  ;;  %v611_v5 = vrot.slane %v2304_v43, 2 }
  0x68   : > { %3598 = vst [vmem:[#allocation35_spill] sm:$0xff] %v2666_v62  ;;  %3599 = vst [vmem:[#allocation36_spill] sm:$0xff] %v2671_v23  ;;  %v2679_v11 = vsel %vm565_vm3, %v607_v9, %v609_v48  ;;  %v2684_v49 = vsel %vm565_vm3, %v606_v27, %v607_v9  ;;  %v617_v48 = vrot.slane %v2309_v44, 2  ;;  %v616_v9 = vrot.slane %v2312_v45, 2 }
  0x69   : > { %656 = vrot.lane.b32.xlu1 %v2601_v50, %s2041_s5  ;;  %3600 = vst [vmem:[#allocation37_spill] sm:$0xff] %v2679_v11  ;;  %3601 = vst [vmem:[#allocation38_spill] sm:$0xff] %v2684_v49 }
  0x6a   : > { %654 = vrot.lane.b32.xlu0 %v2606_v16, %s2041_s5 }
  0x6d   : > { %660 = vrot.lane.b32.xlu1 %v2614_v6, %s2041_s5 }
  0x6e   : > { %658 = vrot.lane.b32.xlu0 %v2619_v28, %s2041_s5 }
  0x71   : > { %664 = vrot.lane.b32.xlu1 %v2627_v4, %s2041_s5 }
  0x72   : > { %662 = vrot.lane.b32.xlu0 %v2632_v37, %s2041_s5 }
  0x75   : > { %668 = vrot.lane.b32.xlu1 %v2640_v15, %s2041_s5 }
  0x76   : > { %666 = vrot.lane.b32.xlu0 %v2645_v55, %s2041_s5 }
  0x79   : > { %672 = vrot.lane.b32.xlu1 %v2653_v40, %s2041_s5  ;;  %v639_v40 = vrot.slane %v2532_v39, 2  ;;  %v642_v39 = vrot.slane %v2386_v63, 2 }
  0x7a   : > { %670 = vrot.lane.b32.xlu0 %v2658_v7, %s2041_s5  ;;  %v614_v7 = vrot.slane %v2452_v10, 2  ;;  %v2697_v10 = vsel %vm565_vm3, %v611_v5, %v612_v53 }
  0x7c   : > { %v2692_v8 = vsel %vm565_vm3, %v612_v53, %v614_v7  ;;  %v622_v7 = vrot.slane %v2323_v46, 2  ;;  %v621_v53 = vrot.slane %v2326_v47, 2 }
  0x7d   : > { %676 = vrot.lane.b32.xlu1 %v2666_v62, %s2041_s5  ;;  %v634_v62 = vrot.slane %v2516_v60, 2 }
  0x7e   : > { %674 = vrot.lane.b32.xlu0 %v2671_v23, %s2041_s5  ;;  %v619_v23 = vrot.slane %v2468_v36, 2  ;;  %v2710_v36 = vsel %vm565_vm3, %v616_v9, %v617_v48 }
  0x80   : > { %v2705_v27 = vsel %vm565_vm3, %v617_v48, %v619_v23  ;;  %v627_v23 = vrot.slane %v2340_v51, 2  ;;  %v626_v48 = vrot.slane %v2343_v52, 2 }
  0x81   : > { %680 = vrot.lane.b32.xlu1 %v2679_v11, %s2041_s5  ;;  %v629_v11 = vrot.slane %v2500_v18, 2 }
  0x82   : > { %678 = vrot.lane.b32.xlu0 %v2684_v49, %s2041_s5  ;;  %v624_v49 = vrot.slane %v2484_v26, 2  ;;  %v2723_v26 = vsel %vm565_vm3, %v621_v53, %v622_v7  ;;  %v2736_v18 = vsel %vm565_vm3, %v626_v48, %v627_v23  ;;  %v636_v48 = vrot.slane %v2374_v59, 2 }
  0x83   : > { %v2731_v9 = vsel %vm565_vm3, %v627_v23, %v629_v11  ;;  %v637_v11 = vrot.slane %v2371_v58, 2 }
  0x84   : > { %v2718_v5 = vsel %vm565_vm3, %v622_v7, %v624_v49  ;;  %v632_v49 = vrot.slane %v2357_v56, 2  ;;  %v631_v7 = vrot.slane %v2364_v57, 2 }
  0x85   : > { %684 = vrot.lane.b32.xlu1 %v2692_v8, %s2041_s5  ;;  %v2764_v59 = vsel %vm565_vm3, %v636_v48, %v637_v11 }
  0x86   : > { %682 = vrot.lane.b32.xlu0 %v2697_v10, %s2041_s5  ;;  %v2744_v53 = vsel %vm565_vm3, %v632_v49, %v634_v62  ;;  %v2749_v23 = vsel %vm565_vm3, %v631_v7, %v632_v49  ;;  %v2759_v62 = vsel %vm565_vm3, %v637_v11, %v639_v40  ;;  %v644_v49 = vrot.slane %v2548_v34, 2 }
  0x88   : > { %v2774_v40 = vsel %vm565_vm3, %v642_v39, %v644_v49 }
  0x89   : > { %688 = vrot.lane.b32.xlu1 %v2705_v27, %s2041_s5 }
  0x8a   : > { %686 = vrot.lane.b32.xlu0 %v2710_v36, %s2041_s5 }
  0x8d   : > { %692 = vrot.lane.b32.xlu1 %v2718_v5, %s2041_s5 }
  0x8e   : > { %690 = vrot.lane.b32.xlu0 %v2723_v26, %s2041_s5 }
  0x91   : > { %696 = vrot.lane.b32.xlu1 %v2731_v9, %s2041_s5 }
  0x92   : > { %694 = vrot.lane.b32.xlu0 %v2736_v18, %s2041_s5 }
  0x93   : > { %v441_v60 = vpop.permute.xlu1 %440 }
  0x94   : > { %535 = vst.msk [vmem:[#allocation2 + $0x10] sm:$0xff] %vm532_vm4, %v441_v60  ;;  %v437_v55 = vpop.permute.xlu0 %436  ;;  %v641_v60 = vrot.slane %v2389_v0, 2 }
  0x95   : > { %533 = vst.msk [vmem:[#allocation2] sm:$0xff] %vm532_vm4, %v437_v55  ;;  %700 = vrot.lane.b32.xlu1 %v2744_v53, %s2041_s5 }
  0x96   : > { %698 = vrot.lane.b32.xlu0 %v2749_v23, %s2041_s5  ;;  %v2777_v11 = vsel %vm565_vm3, %v641_v60, %v642_v39 }
  0x97   : > { %v443_v7 = vpop.permute.xlu1 %442 }
  0x98   : > { %536 = vst.msk [vmem:[#allocation2 + $0x18] sm:$0xff] %vm532_vm4, %v443_v7  ;;  %v439_v55 = vpop.permute.xlu0 %438 }
  0x99   : > { %534 = vst.msk [vmem:[#allocation2 + $0x8] sm:$0xff] %vm532_vm4, %v439_v55  ;;  %704 = vrot.lane.b32.xlu1 %v2759_v62, %s2041_s5 }
  0x9a   : > { %702 = vrot.lane.b32.xlu0 %v2764_v59, %s2041_s5 }
  0x9b   : > { %v447_v34 = vpop.permute.xlu1 %446 }
  0x9c   : > { %538 = vst.msk [vmem:[#allocation2 + $0x28] sm:$0xff] %vm532_vm4, %v447_v34  ;;  %v445_v48 = vpop.permute.xlu0 %444 }
  0x9d   : > { %537 = vst.msk [vmem:[#allocation2 + $0x20] sm:$0xff] %vm532_vm4, %v445_v48  ;;  %708 = vrot.lane.b32.xlu1 %v2774_v40, %s2041_s5 }
  0x9e   : > { %706 = vrot.lane.b32.xlu0 %v2777_v11, %s2041_s5 }
  0x9f   : > { %v451_v7 = vpop.permute.xlu1 %450 }
  0xa0   : > { %540 = vst.msk [vmem:[#allocation2 + $0x38] sm:$0xff] %vm532_vm4, %v451_v7  ;;  %v449_v49 = vpop.permute.xlu0 %448 }
  0xa1   : > { %539 = vst.msk [vmem:[#allocation2 + $0x30] sm:$0xff] %vm532_vm4, %v449_v49  ;;  %779 = vrot.lane.b32.xlu1 %v2171_v2, %s2042_s6 }
  0xa2   : > { %777 = vrot.lane.b32.xlu0 %v2168_v1, %s2042_s6 }
  0xa3   : > { %v455_v39 = vpop.permute.xlu1 %454 }
  0xa4   : > { %542 = vst.msk [vmem:[#allocation2 + $0x48] sm:$0xff] %vm532_vm4, %v455_v39  ;;  %v453_v60 = vpop.permute.xlu0 %452 }
  0xa5   : > { %541 = vst.msk [vmem:[#allocation2 + $0x40] sm:$0xff] %vm532_vm4, %v453_v60  ;;  %783 = vrot.lane.b32.xlu1 %v2197_v12, %s2042_s6 }
  0xa6   : > { %781 = vrot.lane.b32.xlu0 %v2200_v13, %s2042_s6 }
  0xa7   : > { %v459_v55 = vpop.permute.xlu1 %458 }
  0xa8   : > { %544 = vst.msk [vmem:[#allocation2 + $0x58] sm:$0xff] %vm532_vm4, %v459_v55  ;;  %v457_v34 = vpop.permute.xlu0 %456 }
  0xa9   : > { %543 = vst.msk [vmem:[#allocation2 + $0x50] sm:$0xff] %vm532_vm4, %v457_v34  ;;  %787 = vrot.lane.b32.xlu1 %v2212_v17, %s2042_s6 }
  0xaa   : > { %785 = vrot.lane.b32.xlu0 %v2222_v19, %s2042_s6 }
  0xab   : > { %v463_v1 = vpop.permute.xlu1 %462 }
  0xac   : > { %546 = vst.msk [vmem:[#allocation2 + $0x68] sm:$0xff] %vm532_vm4, %v463_v1  ;;  %v461_v2 = vpop.permute.xlu0 %460 }
  0xad   : > { %545 = vst.msk [vmem:[#allocation2 + $0x60] sm:$0xff] %vm532_vm4, %v461_v2  ;;  %791 = vrot.lane.b32.xlu1 %v2225_v20, %s2042_s6 }
  0xae   : > { %789 = vrot.lane.b32.xlu0 %v2236_v24, %s2042_s6 }
  0xaf   : > { %v467_v48 = vpop.permute.xlu1 %466 }
  0xb0   : > { %548 = vst.msk [vmem:[#allocation2 + $0x78] sm:$0xff] %vm532_vm4, %v467_v48  ;;  %v465_v7 = vpop.permute.xlu0 %464 }
  0xb1   : > { %547 = vst.msk [vmem:[#allocation2 + $0x70] sm:$0xff] %vm532_vm4, %v465_v7  ;;  %795 = vrot.lane.b32.xlu1 %v2239_v25, %s2042_s6 }
  0xb2   : > { %793 = vrot.lane.b32.xlu0 %v2251_v29, %s2042_s6 }
  0xb3   : > { %v471_v49 = vpop.permute.xlu1 %470 }
  0xb4   : > { %550 = vst.msk [vmem:[#allocation2 + $0x88] sm:$0xff] %vm532_vm4, %v471_v49  ;;  %v469_v39 = vpop.permute.xlu0 %468 }
  0xb5   : > { %549 = vst.msk [vmem:[#allocation2 + $0x80] sm:$0xff] %vm532_vm4, %v469_v39  ;;  %799 = vrot.lane.b32.xlu1 %v2258_v30, %s2042_s6 }
  0xb6   : > { %797 = vrot.lane.b32.xlu0 %v2261_v31, %s2042_s6 }
  0xb7   : > { %v475_v60 = vpop.permute.xlu1 %474 }
  0xb8   : > { %552 = vst.msk [vmem:[#allocation2 + $0x98] sm:$0xff] %vm532_vm4, %v475_v60  ;;  %v473_v55 = vpop.permute.xlu0 %472 }
  0xb9   : > { %551 = vst.msk [vmem:[#allocation2 + $0x90] sm:$0xff] %vm532_vm4, %v473_v55  ;;  %803 = vrot.lane.b32.xlu1 %v2268_v32, %s2042_s6 }
  0xba   : > { %801 = vrot.lane.b32.xlu0 %v2271_v33, %s2042_s6 }
  0xbb   : > { %v479_v34 = vpop.permute.xlu1 %478 }
  0xbc   : > { %554 = vst.msk [vmem:[#allocation2 + $0xa8] sm:$0xff] %vm532_vm4, %v479_v34  ;;  %v477_v1 = vpop.permute.xlu0 %476 }
  0xbd   : > { %553 = vst.msk [vmem:[#allocation2 + $0xa0] sm:$0xff] %vm532_vm4, %v477_v1  ;;  %807 = vrot.lane.b32.xlu1 %v2287_v38, %s2042_s6 }
  0xbe   : > { %805 = vrot.lane.b32.xlu0 %v2298_v41, %s2042_s6 }
  0xbf   : > { %v483_v2 = vpop.permute.xlu1 %482 }
  0xc0   : > { %556 = vst.msk [vmem:[#allocation2 + $0xb8] sm:$0xff] %vm532_vm4, %v483_v2  ;;  %v481_v48 = vpop.permute.xlu0 %480 }
  0xc1   : > { %555 = vst.msk [vmem:[#allocation2 + $0xb0] sm:$0xff] %vm532_vm4, %v481_v48  ;;  %811 = vrot.lane.b32.xlu1 %v2301_v42, %s2042_s6 }
  0xc2   : > { %809 = vrot.lane.b32.xlu0 %v2304_v43, %s2042_s6 }
  0xc3   : > { %v487_v7 = vpop.permute.xlu1 %486 }
  0xc4   : > { %558 = vst.msk [vmem:[#allocation2 + $0xc8] sm:$0xff] %vm532_vm4, %v487_v7  ;;  %v485_v49 = vpop.permute.xlu0 %484 }
  0xc5   : > { %557 = vst.msk [vmem:[#allocation2 + $0xc0] sm:$0xff] %vm532_vm4, %v485_v49  ;;  %815 = vrot.lane.b32.xlu1 %v2309_v44, %s2042_s6 }
  0xc6   : > { %813 = vrot.lane.b32.xlu0 %v2312_v45, %s2042_s6 }
  0xc7   : > { %v491_v39 = vpop.permute.xlu1 %490 }
  0xc8   : > { %560 = vst.msk [vmem:[#allocation2 + $0xd8] sm:$0xff] %vm532_vm4, %v491_v39  ;;  %v489_v60 = vpop.permute.xlu0 %488 }
  0xc9   : > { %559 = vst.msk [vmem:[#allocation2 + $0xd0] sm:$0xff] %vm532_vm4, %v489_v60  ;;  %946 = vrot.lane.b32.xlu1 %v2475_v61, %s2043_s7  ;;  %v3604_v60 = vld [vmem:[#allocation7_spill] sm:$0xff] }
  0xca   : > { %944 = vrot.lane.b32.xlu0 %v2480_v54, %s2043_s7 }
  0xcb   : > { %v495_v55 = vpop.permute.xlu1 %494 }
  0xcc   : > { %562 = vst.msk [vmem:[#allocation2 + $0xe8] sm:$0xff] %vm532_vm4, %v495_v55  ;;  %v493_v34 = vpop.permute.xlu0 %492 }
  0xcd   : > { %561 = vst.msk [vmem:[#allocation2 + $0xe0] sm:$0xff] %vm532_vm4, %v493_v34  ;;  %914 = vrot.lane.b32.xlu1 %v2231_v21, %s2043_s7 }
  0xce   : > { %912 = vrot.lane.b32.xlu0 %v2205_v14, %s2043_s7 }
  0xcf   : > { %v499_v1 = vpop.permute.xlu1 %498 }
  0xd0   : > { %564 = vst.msk [vmem:[#allocation2 + $0xf8] sm:$0xff] %vm532_vm4, %v499_v1  ;;  %v497_v2 = vpop.permute.xlu0 %496 }
  0xd1   : > { %563 = vst.msk [vmem:[#allocation2 + $0xf0] sm:$0xff] %vm532_vm4, %v497_v2  ;;  %1080 = vrot.lane.b32.xlu1 %v2692_v8, %s2044_s8 }
  0xd2   : > { %1078 = vrot.lane.b32.xlu0 %v2697_v10, %s2044_s8 }
  0xd3   : > { %v649_v48 = vpop.permute.xlu1 %648 }
  0xd4   : > { %744 = vst.msk [vmem:[#allocation2 + $0x8] sm:$0xff] %vm742_vm5, %v649_v48  ;;  %v647_v21 = vpop.permute.xlu0 %646 }
  0xd5   : > { %743 = vst.msk [vmem:[#allocation2] sm:$0xff] %vm742_vm5, %v647_v21  ;;  %1048 = vrot.lane.b32.xlu1 %v2588_v3, %s2044_s8 }
  0xd6   : > { %1046 = vrot.lane.b32.xlu0 %v2593_v22, %s2044_s8 }
  0xd7   : > { %v653_v14 = vpop.permute.xlu1 %652 }
  0xd8   : > { %746 = vst.msk [vmem:[#allocation2 + $0x18] sm:$0xff] %vm742_vm5, %v653_v14  ;;  %v651_v7 = vpop.permute.xlu0 %650 }
  0xd9   : > { %745 = vst.msk [vmem:[#allocation2 + $0x10] sm:$0xff] %vm742_vm5, %v651_v7  ;;  %1211 = vrot.lane.b32.xlu1 %v2309_v44, %s2045_s9  ;;  %v3602_v44 = vld [vmem:[#allocation21_spill] sm:$0xff] }
  0xda   : > { %1209 = vrot.lane.b32.xlu0 %v2312_v45, %s2045_s9 }
  0xdb   : > { %v657_v49 = vpop.permute.xlu1 %656 }
  0xdc   : > { %748 = vst.msk [vmem:[#allocation2 + $0x28] sm:$0xff] %vm742_vm5, %v657_v49  ;;  %v655_v3 = vpop.permute.xlu0 %654 }
  0xdd   : > { %747 = vst.msk [vmem:[#allocation2 + $0x20] sm:$0xff] %vm742_vm5, %v655_v3  ;;  %1179 = vrot.lane.b32.xlu1 %v2197_v12, %s2045_s9 }
  0xde   : > { %1177 = vrot.lane.b32.xlu0 %v2200_v13, %s2045_s9  ;;  %v3603_v13 = vld [vmem:[#allocation6_spill] sm:$0xff] }
  0xdf   : > { %v661_v22 = vpop.permute.xlu1 %660 }
  0xe0   : > { %750 = vst.msk [vmem:[#allocation2 + $0x38] sm:$0xff] %vm742_vm5, %v661_v22  ;;  %v659_v39 = vpop.permute.xlu0 %658 }
  0xe1   : > { %749 = vst.msk [vmem:[#allocation2 + $0x30] sm:$0xff] %vm742_vm5, %v659_v39  ;;  %1346 = vrot.lane.b32.xlu1 %v2491_v35, %s2046_s10 }
  0xe2   : > { %1344 = vrot.lane.b32.xlu0 %v3602_v44, %s2046_s10 }
  0xe3   : > { %v665_v45 = vpop.permute.xlu1 %664 }
  0xe4   : > { %752 = vst.msk [vmem:[#allocation2 + $0x48] sm:$0xff] %vm742_vm5, %v665_v45  ;;  %v663_v12 = vpop.permute.xlu0 %662  ;;  %v3605_v45 = vld [vmem:[#allocation22_spill] sm:$0xff] }
  0xe5   : > { %751 = vst.msk [vmem:[#allocation2 + $0x40] sm:$0xff] %vm742_vm5, %v663_v12  ;;  %1314 = vrot.lane.b32.xlu1 %v3603_v13, %s2046_s10  ;;  %v3606_v12 = vld [vmem:[#allocation23_spill] sm:$0xff] }
  0xe6   : > { %1312 = vrot.lane.b32.xlu0 %v3604_v60, %s2046_s10 }
  0xe7   : > { %v669_v55 = vpop.permute.xlu1 %668 }
  0xe8   : > { %754 = vst.msk [vmem:[#allocation2 + $0x58] sm:$0xff] %vm742_vm5, %v669_v55  ;;  %v667_v34 = vpop.permute.xlu0 %666 }
  0xe9   : > { %753 = vst.msk [vmem:[#allocation2 + $0x50] sm:$0xff] %vm742_vm5, %v667_v34  ;;  %1480 = vrot.lane.b32.xlu1 %v2705_v27, %s2047_s11 }
  0xea   : > { %1478 = vrot.lane.b32.xlu0 %v2710_v36, %s2047_s11 }
  0xeb   : > { %v673_v1 = vpop.permute.xlu1 %672 }
  0xec   : > { %756 = vst.msk [vmem:[#allocation2 + $0x68] sm:$0xff] %vm742_vm5, %v673_v1  ;;  %v671_v2 = vpop.permute.xlu0 %670 }
  0xed   : > { %755 = vst.msk [vmem:[#allocation2 + $0x60] sm:$0xff] %vm742_vm5, %v671_v2  ;;  %1448 = vrot.lane.b32.xlu1 %v2601_v50, %s2047_s11 }
  0xee   : > { %1446 = vrot.lane.b32.xlu0 %v2606_v16, %s2047_s11 }
  0xef   : > { %v677_v48 = vpop.permute.xlu1 %676 }
  0xf0   : > { %758 = vst.msk [vmem:[#allocation2 + $0x78] sm:$0xff] %vm742_vm5, %v677_v48  ;;  %v675_v21 = vpop.permute.xlu0 %674 }
  0xf1   : > { %757 = vst.msk [vmem:[#allocation2 + $0x70] sm:$0xff] %vm742_vm5, %v675_v21  ;;  %950 = vrot.lane.b32.xlu1 %v2491_v35, %s2043_s7 }
  0xf2   : > { %948 = vrot.lane.b32.xlu0 %v3602_v44, %s2043_s7 }
  0xf3   : > { %v681_v14 = vpop.permute.xlu1 %680 }
  0xf4   : > { %760 = vst.msk [vmem:[#allocation2 + $0x88] sm:$0xff] %vm742_vm5, %v681_v14  ;;  %v679_v7 = vpop.permute.xlu0 %678 }
  0xf5   : > { %759 = vst.msk [vmem:[#allocation2 + $0x80] sm:$0xff] %vm742_vm5, %v679_v7  ;;  %918 = vrot.lane.b32.xlu1 %v3603_v13, %s2043_s7 }
  0xf6   : > { %916 = vrot.lane.b32.xlu0 %v3604_v60, %s2043_s7 }
  0xf7   : > { %v685_v49 = vpop.permute.xlu1 %684 }
  0xf8   : > { %762 = vst.msk [vmem:[#allocation2 + $0x98] sm:$0xff] %vm742_vm5, %v685_v49  ;;  %v683_v3 = vpop.permute.xlu0 %682 }
  0xf9   : > { %761 = vst.msk [vmem:[#allocation2 + $0x90] sm:$0xff] %vm742_vm5, %v683_v3  ;;  %1084 = vrot.lane.b32.xlu1 %v2705_v27, %s2044_s8 }
  0xfa   : > { %1082 = vrot.lane.b32.xlu0 %v2710_v36, %s2044_s8 }
  0xfb   : > { %v689_v35 = vpop.permute.xlu1 %688 }
  0xfc   : > { %764 = vst.msk [vmem:[#allocation2 + $0xa8] sm:$0xff] %vm742_vm5, %v689_v35  ;;  %v687_v22 = vpop.permute.xlu0 %686 }
  0xfd   : > { %763 = vst.msk [vmem:[#allocation2 + $0xa0] sm:$0xff] %vm742_vm5, %v687_v22  ;;  %1052 = vrot.lane.b32.xlu1 %v2601_v50, %s2044_s8 }
  0xfe   : > { %1050 = vrot.lane.b32.xlu0 %v2606_v16, %s2044_s8 }
  0xff   : > { %v693_v39 = vpop.permute.xlu1 %692 }
 0x100   : > { %766 = vst.msk [vmem:[#allocation2 + $0xb8] sm:$0xff] %vm742_vm5, %v693_v39  ;;  %v691_v44 = vpop.permute.xlu0 %690 }
 0x101   : > { %765 = vst.msk [vmem:[#allocation2 + $0xb0] sm:$0xff] %vm742_vm5, %v691_v44  ;;  %1215 = vrot.lane.b32.xlu1 %v2323_v46, %s2045_s9 }
 0x102   : > { %1213 = vrot.lane.b32.xlu0 %v2326_v47, %s2045_s9 }
 0x103   : > { %v697_v27 = vpop.permute.xlu1 %696 }
 0x104   : > { %768 = vst.msk [vmem:[#allocation2 + $0xc8] sm:$0xff] %vm742_vm5, %v697_v27  ;;  %v695_v36 = vpop.permute.xlu0 %694  ;;  %v3609_v27 = vld [vmem:[#allocation24_spill] sm:$0xff] }
 0x105   : > { %767 = vst.msk [vmem:[#allocation2 + $0xc0] sm:$0xff] %vm742_vm5, %v695_v36  ;;  %1183 = vrot.lane.b32.xlu1 %v2212_v17, %s2045_s9  ;;  %v3607_v17 = vld [vmem:[#allocation8_spill] sm:$0xff]  ;;  %v3610_v36 = vld [vmem:[#allocation25_spill] sm:$0xff] }
 0x106   : > { %1181 = vrot.lane.b32.xlu0 %v2222_v19, %s2045_s9  ;;  %v3608_v19 = vld [vmem:[#allocation9_spill] sm:$0xff] }
 0x107   : > { %v701_v50 = vpop.permute.xlu1 %700 }
 0x108   : > { %770 = vst.msk [vmem:[#allocation2 + $0xd8] sm:$0xff] %vm742_vm5, %v701_v50  ;;  %v699_v16 = vpop.permute.xlu0 %698 }
 0x109   : > { %769 = vst.msk [vmem:[#allocation2 + $0xd0] sm:$0xff] %vm742_vm5, %v699_v16  ;;  %1350 = vrot.lane.b32.xlu1 %v3605_v45, %s2046_s10 }
 0x10a   : > { %1348 = vrot.lane.b32.xlu0 %v3606_v12, %s2046_s10 }
 0x10b   : > { %v705_v13 = vpop.permute.xlu1 %704 }
 0x10c   : > { %772 = vst.msk [vmem:[#allocation2 + $0xe8] sm:$0xff] %vm742_vm5, %v705_v13  ;;  %v703_v60 = vpop.permute.xlu0 %702 }
 0x10d   : > { %771 = vst.msk [vmem:[#allocation2 + $0xe0] sm:$0xff] %vm742_vm5, %v703_v60  ;;  %1318 = vrot.lane.b32.xlu1 %v3607_v17, %s2046_s10 }
 0x10e   : > { %1316 = vrot.lane.b32.xlu0 %v3608_v19, %s2046_s10 }
 0x10f   : > { %v709_v55 = vpop.permute.xlu1 %708 }
 0x110   : > { %774 = vst.msk [vmem:[#allocation2 + $0xf8] sm:$0xff] %vm742_vm5, %v709_v55  ;;  %v707_v34 = vpop.permute.xlu0 %706 }
 0x111   : > { %773 = vst.msk [vmem:[#allocation2 + $0xf0] sm:$0xff] %vm742_vm5, %v707_v34  ;;  %1484 = vrot.lane.b32.xlu1 %v2718_v5, %s2047_s11 }
 0x112   : > { %1482 = vrot.lane.b32.xlu0 %v2723_v26, %s2047_s11 }
 0x113   : > { %v780_v1 = vpop.permute.xlu1 %779 }
 0x114   : > { %875 = vst.msk [vmem:[#allocation2 + $0x8] sm:$0xff] %vm873_vm6, %v780_v1  ;;  %v778_v2 = vpop.permute.xlu0 %777 }
 0x115   : > { %874 = vst.msk [vmem:[#allocation2] sm:$0xff] %vm873_vm6, %v778_v2  ;;  %1452 = vrot.lane.b32.xlu1 %v2614_v6, %s2047_s11 }
 0x116   : > { %1450 = vrot.lane.b32.xlu0 %v2619_v28, %s2047_s11 }
 0x117   : > { %v784_v48 = vpop.permute.xlu1 %783 }
 0x118   : > { %877 = vst.msk [vmem:[#allocation2 + $0x18] sm:$0xff] %vm873_vm6, %v784_v48  ;;  %v782_v21 = vpop.permute.xlu0 %781 }
 0x119   : > { %876 = vst.msk [vmem:[#allocation2 + $0x10] sm:$0xff] %vm873_vm6, %v782_v21  ;;  %819 = vrot.lane.b32.xlu1 %v2323_v46, %s2042_s6 }
 0x11a   : > { %817 = vrot.lane.b32.xlu0 %v2326_v47, %s2042_s6 }
 0x11b   : > { %v788_v14 = vpop.permute.xlu1 %787 }
 0x11c   : > { %879 = vst.msk [vmem:[#allocation2 + $0x28] sm:$0xff] %vm873_vm6, %v788_v14  ;;  %v786_v7 = vpop.permute.xlu0 %785 }
 0x11d   : > { %878 = vst.msk [vmem:[#allocation2 + $0x20] sm:$0xff] %vm873_vm6, %v786_v7  ;;  %954 = vrot.lane.b32.xlu1 %v3605_v45, %s2043_s7 }
 0x11e   : > { %952 = vrot.lane.b32.xlu0 %v3606_v12, %s2043_s7 }
 0x11f   : > { %v792_v49 = vpop.permute.xlu1 %791 }
 0x120   : > { %881 = vst.msk [vmem:[#allocation2 + $0x38] sm:$0xff] %vm873_vm6, %v792_v49  ;;  %v790_v3 = vpop.permute.xlu0 %789  ;;  %v3613_v49 = vld [vmem:[#allocation26_spill] sm:$0xff] }
 0x121   : > { %880 = vst.msk [vmem:[#allocation2 + $0x30] sm:$0xff] %vm873_vm6, %v790_v3  ;;  %922 = vrot.lane.b32.xlu1 %v3607_v17, %s2043_s7  ;;  %v3614_v3 = vld [vmem:[#allocation27_spill] sm:$0xff] }
 0x122   : > { %920 = vrot.lane.b32.xlu0 %v3608_v19, %s2043_s7 }
 0x123   : > { %v796_v46 = vpop.permute.xlu1 %795 }
 0x124   : > { %883 = vst.msk [vmem:[#allocation2 + $0x48] sm:$0xff] %vm873_vm6, %v796_v46  ;;  %v794_v47 = vpop.permute.xlu0 %793 }
 0x125   : > { %882 = vst.msk [vmem:[#allocation2 + $0x40] sm:$0xff] %vm873_vm6, %v794_v47  ;;  %1088 = vrot.lane.b32.xlu1 %v2718_v5, %s2044_s8 }
 0x126   : > { %1086 = vrot.lane.b32.xlu0 %v2723_v26, %s2044_s8 }
 0x127   : > { %v800_v35 = vpop.permute.xlu1 %799 }
 0x128   : > { %885 = vst.msk [vmem:[#allocation2 + $0x58] sm:$0xff] %vm873_vm6, %v800_v35  ;;  %v798_v22 = vpop.permute.xlu0 %797 }
 0x129   : > { %884 = vst.msk [vmem:[#allocation2 + $0x50] sm:$0xff] %vm873_vm6, %v798_v22  ;;  %1056 = vrot.lane.b32.xlu1 %v2614_v6, %s2044_s8 }
 0x12a   : > { %1054 = vrot.lane.b32.xlu0 %v2619_v28, %s2044_s8 }
 0x12b   : > { %v804_v39 = vpop.permute.xlu1 %803 }
 0x12c   : > { %887 = vst.msk [vmem:[#allocation2 + $0x68] sm:$0xff] %vm873_vm6, %v804_v39  ;;  %v802_v44 = vpop.permute.xlu0 %801  ;;  %v3616_v39 = vld [vmem:[#allocation14_spill] sm:$0xff] }
 0x12d   : > { %886 = vst.msk [vmem:[#allocation2 + $0x60] sm:$0xff] %vm873_vm6, %v802_v44  ;;  %1219 = vrot.lane.b32.xlu1 %v2340_v51, %s2045_s9 }
 0x12e   : > { %1217 = vrot.lane.b32.xlu0 %v2343_v52, %s2045_s9 }
 0x12f   : > { %v808_v5 = vpop.permute.xlu1 %807 }
 0x130   : > { %889 = vst.msk [vmem:[#allocation2 + $0x78] sm:$0xff] %vm873_vm6, %v808_v5  ;;  %v806_v26 = vpop.permute.xlu0 %805 }
 0x131   : > { %888 = vst.msk [vmem:[#allocation2 + $0x70] sm:$0xff] %vm873_vm6, %v806_v26  ;;  %1187 = vrot.lane.b32.xlu1 %v2225_v20, %s2045_s9  ;;  %v3611_v20 = vld [vmem:[#allocation11_spill] sm:$0xff] }
 0x132   : > { %1185 = vrot.lane.b32.xlu0 %v2236_v24, %s2045_s9  ;;  %v3612_v24 = vld [vmem:[#allocation12_spill] sm:$0xff] }
 0x133   : > { %v812_v6 = vpop.permute.xlu1 %811 }
 0x134   : > { %891 = vst.msk [vmem:[#allocation2 + $0x88] sm:$0xff] %vm873_vm6, %v812_v6  ;;  %v810_v28 = vpop.permute.xlu0 %809 }
 0x135   : > { %890 = vst.msk [vmem:[#allocation2 + $0x80] sm:$0xff] %vm873_vm6, %v810_v28  ;;  %1354 = vrot.lane.b32.xlu1 %v3609_v27, %s2046_s10 }
 0x136   : > { %1352 = vrot.lane.b32.xlu0 %v3610_v36, %s2046_s10 }
 0x137   : > { %v816_v50 = vpop.permute.xlu1 %815 }
 0x138   : > { %893 = vst.msk [vmem:[#allocation2 + $0x98] sm:$0xff] %vm873_vm6, %v816_v50  ;;  %v814_v16 = vpop.permute.xlu0 %813  ;;  %v3617_v50 = vld [vmem:[#allocation32_spill] sm:$0xff] }
 0x139   : > { %892 = vst.msk [vmem:[#allocation2 + $0x90] sm:$0xff] %vm873_vm6, %v814_v16  ;;  %1322 = vrot.lane.b32.xlu1 %v3611_v20, %s2046_s10 }
 0x13a   : > { %1320 = vrot.lane.b32.xlu0 %v3612_v24, %s2046_s10 }
 0x13b   : > { %v947_v45 = vpop.permute.xlu1 %946 }
 0x13c   : > { %1026 = vst.msk [vmem:[#allocation2 + $0x88] sm:$0xff] %vm1008_vm7, %v947_v45  ;;  %v945_v12 = vpop.permute.xlu0 %944 }
 0x13d   : > { %1025 = vst.msk [vmem:[#allocation2 + $0x80] sm:$0xff] %vm1008_vm7, %v945_v12  ;;  %1488 = vrot.lane.b32.xlu1 %v2731_v9, %s2047_s11 }
 0x13e   : > { %1486 = vrot.lane.b32.xlu0 %v2736_v18, %s2047_s11 }
 0x13f   : > { %v915_v13 = vpop.permute.xlu1 %914 }
 0x140   : > { %1010 = vst.msk [vmem:[#allocation2 + $0x8] sm:$0xff] %vm1008_vm7, %v915_v13  ;;  %v913_v60 = vpop.permute.xlu0 %912 }
 0x141   : > { %1009 = vst.msk [vmem:[#allocation2] sm:$0xff] %vm1008_vm7, %v913_v60  ;;  %1456 = vrot.lane.b32.xlu1 %v2627_v4, %s2047_s11 }
 0x142   : > { %1454 = vrot.lane.b32.xlu0 %v2632_v37, %s2047_s11 }
 0x143   : > { %v1081_v17 = vpop.permute.xlu1 %1080 }
 0x144   : > { %1160 = vst.msk [vmem:[#allocation2 + $0x88] sm:$0xff] %vm1142_vm8, %v1081_v17  ;;  %v1079_v19 = vpop.permute.xlu0 %1078 }
 0x145   : > { %1159 = vst.msk [vmem:[#allocation2 + $0x80] sm:$0xff] %vm1142_vm8, %v1079_v19  ;;  %823 = vrot.lane.b32.xlu1 %v2340_v51, %s2042_s6 }
 0x146   : > { %821 = vrot.lane.b32.xlu0 %v2343_v52, %s2042_s6 }
 0x147   : > { %v1049_v55 = vpop.permute.xlu1 %1048 }
 0x148   : > { %1144 = vst.msk [vmem:[#allocation2 + $0x8] sm:$0xff] %vm1142_vm8, %v1049_v55  ;;  %v1047_v34 = vpop.permute.xlu0 %1046 }
 0x149   : > { %1143 = vst.msk [vmem:[#allocation2] sm:$0xff] %vm1142_vm8, %v1047_v34  ;;  %958 = vrot.lane.b32.xlu1 %v3609_v27, %s2043_s7 }
 0x14a   : > { %956 = vrot.lane.b32.xlu0 %v3610_v36, %s2043_s7 }
 0x14b   : > { %v1212_v1 = vpop.permute.xlu1 %1211 }
 0x14c   : > { %1291 = vst.msk [vmem:[#allocation2 + $0x88] sm:$0xff] %vm1273_vm9, %v1212_v1  ;;  %v1210_v51 = vpop.permute.xlu0 %1209 }
 0x14d   : > { %1290 = vst.msk [vmem:[#allocation2 + $0x80] sm:$0xff] %vm1273_vm9, %v1210_v51  ;;  %926 = vrot.lane.b32.xlu1 %v3611_v20, %s2043_s7 }
 0x14e   : > { %924 = vrot.lane.b32.xlu0 %v3612_v24, %s2043_s7 }
 0x14f   : > { %v1180_v52 = vpop.permute.xlu1 %1179 }
 0x150   : > { %1275 = vst.msk [vmem:[#allocation2 + $0x8] sm:$0xff] %vm1273_vm9, %v1180_v52  ;;  %v1178_v2 = vpop.permute.xlu0 %1177 }
 0x151   : > { %1274 = vst.msk [vmem:[#allocation2] sm:$0xff] %vm1273_vm9, %v1178_v2  ;;  %1092 = vrot.lane.b32.xlu1 %v2731_v9, %s2044_s8  ;;  %v3619_v2 = vld [vmem:[#allocation28_spill] sm:$0xff] }
 0x152   : > { %1090 = vrot.lane.b32.xlu0 %v2736_v18, %s2044_s8 }
 0x153   : > { %v1347_v48 = vpop.permute.xlu1 %1346 }
 0x154   : > { %1426 = vst.msk [vmem:[#allocation2 + $0x88] sm:$0xff] %vm1408_vm10, %v1347_v48  ;;  %v1345_v21 = vpop.permute.xlu0 %1344 }
 0x155   : > { %1425 = vst.msk [vmem:[#allocation2 + $0x80] sm:$0xff] %vm1408_vm10, %v1345_v21  ;;  %1060 = vrot.lane.b32.xlu1 %v2627_v4, %s2044_s8  ;;  %v3620_v21 = vld [vmem:[#allocation29_spill] sm:$0xff] }
 0x156   : > { %1058 = vrot.lane.b32.xlu0 %v2632_v37, %s2044_s8 }
 0x157   : > { %v1315_v14 = vpop.permute.xlu1 %1314 }
 0x158   : > { %1410 = vst.msk [vmem:[#allocation2 + $0x8] sm:$0xff] %vm1408_vm10, %v1315_v14  ;;  %v1313_v9 = vpop.permute.xlu0 %1312 }
 0x159   : > { %1409 = vst.msk [vmem:[#allocation2] sm:$0xff] %vm1408_vm10, %v1313_v9  ;;  %1223 = vrot.lane.b32.xlu1 %v2357_v56, %s2045_s9 }
 0x15a   : > { %1221 = vrot.lane.b32.xlu0 %v2364_v57, %s2045_s9 }
 0x15b   : > { %v1481_v18 = vpop.permute.xlu1 %1480 }
 0x15c   : > { %1560 = vst.msk [vmem:[#allocation2 + $0x88] sm:$0xff] %vm1542_vm11, %v1481_v18  ;;  %v1479_v4 = vpop.permute.xlu0 %1478  ;;  %v3621_v18 = vld [vmem:[#allocation15_spill] sm:$0xff] }
 0x15d   : > { %1559 = vst.msk [vmem:[#allocation2 + $0x80] sm:$0xff] %vm1542_vm11, %v1479_v4  ;;  %1191 = vrot.lane.b32.xlu1 %v2239_v25, %s2045_s9 }
 0x15e   : > { %1189 = vrot.lane.b32.xlu0 %v2251_v29, %s2045_s9  ;;  %v3615_v29 = vld [vmem:[#allocation13_spill] sm:$0xff] }
 0x15f   : > { %v1449_v37 = vpop.permute.xlu1 %1448 }
 0x160   : > { %1544 = vst.msk [vmem:[#allocation2 + $0x8] sm:$0xff] %vm1542_vm11, %v1449_v37  ;;  %v1447_v7 = vpop.permute.xlu0 %1446  ;;  %v3622_v37 = vld [vmem:[#allocation16_spill] sm:$0xff] }
 0x161   : > { %1543 = vst.msk [vmem:[#allocation2] sm:$0xff] %vm1542_vm11, %v1447_v7  ;;  %1358 = vrot.lane.b32.xlu1 %v3613_v49, %s2046_s10 }
 0x162   : > { %1356 = vrot.lane.b32.xlu0 %v3614_v3, %s2046_s10 }
 0x163   : > { %v951_v46 = vpop.permute.xlu1 %950  ;;  %v1594_v47 = vld [vmem:[#allocation2 + $0x88] sm:$0xff] }
 0x164   : > { %1028 = vst.msk [vmem:[#allocation2 + $0x98] sm:$0xff] %vm1008_vm7, %v951_v46  ;;  %v949_v25 = vpop.permute.xlu0 %948  ;;  %v1593_v35 = vld [vmem:[#allocation2 + $0x80] sm:$0xff] }
 0x165   : > { %1027 = vst.msk [vmem:[#allocation2 + $0x90] sm:$0xff] %vm1008_vm7, %v949_v25  ;;  %1326 = vrot.lane.b32.xlu1 %v3615_v29, %s2046_s10  ;;  %v1842_v22 = vpack.c.bf16 %v1594_v47, %v1593_v35  ;;  %v3623_v47 = vld [vmem:[#allocation33_spill] sm:$0xff]  ;;  %v3624_v25 = vld [vmem:[#allocation34_spill] sm:$0xff] }
 0x166   : > { %1324 = vrot.lane.b32.xlu0 %v3616_v39, %s2046_s10 }
 0x167   : > { %1843 = vmatprep.subr.bf16.mxu0 %v1842_v22  ;;  %1874 = vmatprep.subr.bf16.mxu1 %v1842_v22  ;;  %v919_v44 = vpop.permute.xlu1 %918  ;;  %v1578_v5 = vld [vmem:[#allocation2 + $0x8] sm:$0xff] }
 0x168   : > { %1012 = vst.msk [vmem:[#allocation2 + $0x18] sm:$0xff] %vm1008_vm7, %v919_v44  ;;  %v917_v26 = vpop.permute.xlu0 %916  ;;  %v1577_v6 = vld [vmem:[#allocation2] sm:$0xff] }
 0x169   : > { %1011 = vst.msk [vmem:[#allocation2 + $0x10] sm:$0xff] %vm1008_vm7, %v917_v26  ;;  %1492 = vrot.lane.b32.xlu1 %v2744_v53, %s2047_s11  ;;  %v1844_v28 = vpack.c.bf16 %v1578_v5, %v1577_v6 }
 0x16a   : > { %1490 = vrot.lane.b32.xlu0 %v2749_v23, %s2047_s11 }
 0x16b   : > { %1845 = vmatpush3.bf16.xpose.msra.mxu0 %v1844_v28  ;;  %1882 = vmatpush3.bf16.xpose.msra.mxu1 %v1844_v28  ;;  %v1085_v27 = vpop.permute.xlu1 %1084 }
 0x16c   : > { %1162 = vst.msk [vmem:[#allocation2 + $0x98] sm:$0xff] %vm1142_vm8, %v1085_v27  ;;  %v1083_v36 = vpop.permute.xlu0 %1082 }
 0x16d   : > { %1161 = vst.msk [vmem:[#allocation2 + $0x90] sm:$0xff] %vm1142_vm8, %v1083_v36  ;;  %1460 = vrot.lane.b32.xlu1 %v2640_v15, %s2047_s11 }
 0x16e   : > { %1458 = vrot.lane.b32.xlu0 %v3617_v50, %s2047_s11 }
 0x16f   : > { %v1053_v16 = vpop.permute.xlu1 %1052 }
 0x170   : > { %1146 = vst.msk [vmem:[#allocation2 + $0x18] sm:$0xff] %vm1142_vm8, %v1053_v16  ;;  %v1051_v20 = vpop.permute.xlu0 %1050 }
 0x171   : > { %1145 = vst.msk [vmem:[#allocation2 + $0x10] sm:$0xff] %vm1142_vm8, %v1051_v20  ;;  %827 = vrot.lane.b32.xlu1 %v2357_v56, %s2042_s6 }
 0x172   : > { %825 = vrot.lane.b32.xlu0 %v2364_v57, %s2042_s6 }
 0x173   : > { %v1216_v24 = vpop.permute.xlu1 %1215 }
 0x174   : > { %1293 = vst.msk [vmem:[#allocation2 + $0x98] sm:$0xff] %vm1273_vm9, %v1216_v24  ;;  %v1214_v45 = vpop.permute.xlu0 %1213 }
 0x175   : > { %1292 = vst.msk [vmem:[#allocation2 + $0x90] sm:$0xff] %vm1273_vm9, %v1214_v45  ;;  %962 = vrot.lane.b32.xlu1 %v3613_v49, %s2043_s7  ;;  %v3625_v45 = vld [vmem:[#allocation30_spill] sm:$0xff] }
 0x176   : > { %960 = vrot.lane.b32.xlu0 %v3614_v3, %s2043_s7 }
 0x177   : > { %v1184_v12 = vpop.permute.xlu1 %1183 }
 0x178   : > { %1277 = vst.msk [vmem:[#allocation2 + $0x18] sm:$0xff] %vm1273_vm9, %v1184_v12  ;;  %v1182_v13 = vpop.permute.xlu0 %1181 }
 0x179   : > { %1276 = vst.msk [vmem:[#allocation2 + $0x10] sm:$0xff] %vm1273_vm9, %v1182_v13  ;;  %930 = vrot.lane.b32.xlu1 %v3615_v29, %s2043_s7  ;;  %v3626_v13 = vld [vmem:[#allocation31_spill] sm:$0xff] }
 0x17a   : > { %928 = vrot.lane.b32.xlu0 %v3616_v39, %s2043_s7 }
 0x17b   : > { %v1351_v56 = vpop.permute.xlu1 %1350 }
 0x17c   : > { %1428 = vst.msk [vmem:[#allocation2 + $0x98] sm:$0xff] %vm1408_vm10, %v1351_v56  ;;  %v1349_v57 = vpop.permute.xlu0 %1348 }
 0x17d   : > { %1427 = vst.msk [vmem:[#allocation2 + $0x90] sm:$0xff] %vm1408_vm10, %v1349_v57  ;;  %1096 = vrot.lane.b32.xlu1 %v2744_v53, %s2044_s8  ;;  %v3618_v53 = vld [vmem:[#allocation10_spill] sm:$0xff] }
 0x17e   : > { %1094 = vrot.lane.b32.xlu0 %v2749_v23, %s2044_s8 }
 0x17f   : > { %v1319_v60 = vpop.permute.xlu1 %1318 }
 0x180   : > { %1412 = vst.msk [vmem:[#allocation2 + $0x18] sm:$0xff] %vm1408_vm10, %v1319_v60  ;;  %v1317_v17 = vpop.permute.xlu0 %1316  ;;  %v3627_v60 = vld [vmem:[#allocation17_spill] sm:$0xff] }
 0x181   : > { %1411 = vst.msk [vmem:[#allocation2 + $0x10] sm:$0xff] %vm1408_vm10, %v1317_v17  ;;  %1064 = vrot.lane.b32.xlu1 %v2640_v15, %s2044_s8 }
 0x182   : > { %1062 = vrot.lane.b32.xlu0 %v3617_v50, %s2044_s8 }
 0x183   : > { %v1485_v19 = vpop.permute.xlu1 %1484 }
 0x184   : > { %1562 = vst.msk [vmem:[#allocation2 + $0x98] sm:$0xff] %vm1542_vm11, %v1485_v19  ;;  %v1483_v55 = vpop.permute.xlu0 %1482  ;;  %v3628_v19 = vld [vmem:[#allocation18_spill] sm:$0xff] }
 0x185   : > { %1561 = vst.msk [vmem:[#allocation2 + $0x90] sm:$0xff] %vm1542_vm11, %v1483_v55  ;;  %1227 = vrot.lane.b32.xlu1 %v2371_v58, %s2045_s9 }
 0x186   : > { %1225 = vrot.lane.b32.xlu0 %v3618_v53, %s2045_s9 }
 0x187   : > { %v1453_v23 = vpop.permute.xlu1 %1452 }
 0x188   : > { %1546 = vst.msk [vmem:[#allocation2 + $0x18] sm:$0xff] %vm1542_vm11, %v1453_v23  ;;  %v1451_v34 = vpop.permute.xlu0 %1450 }
 0x189   : > { %1545 = vst.msk [vmem:[#allocation2 + $0x10] sm:$0xff] %vm1542_vm11, %v1451_v34  ;;  %1195 = vrot.lane.b32.xlu1 %v2258_v30, %s2045_s9 }
 0x18a   : > { %1193 = vrot.lane.b32.xlu0 %v2261_v31, %s2045_s9 }
 0x18b   : > { %v820_v15 = vpop.permute.xlu1 %819  ;;  %v1596_v1 = vld [vmem:[#allocation2 + $0x98] sm:$0xff] }
 0x18c   : > { %895 = vst.msk [vmem:[#allocation2 + $0xa8] sm:$0xff] %vm873_vm6, %v820_v15  ;;  %v818_v51 = vpop.permute.xlu0 %817  ;;  %v1595_v52 = vld [vmem:[#allocation2 + $0x90] sm:$0xff]  ;;  %v3629_v15 = vld [vmem:[#allocation35_spill] sm:$0xff] }
 0x18d   : > { %894 = vst.msk [vmem:[#allocation2 + $0xa0] sm:$0xff] %vm873_vm6, %v818_v51  ;;  %1362 = vrot.lane.b32.xlu1 %v3619_v2, %s2046_s10  ;;  %v1846_v48 = vpack.c.bf16 %v1596_v1, %v1595_v52  ;;  %v3630_v1 = vld [vmem:[#allocation36_spill] sm:$0xff] }
 0x18e   : > { %1360 = vrot.lane.b32.xlu0 %v3620_v21, %s2046_s10 }
 0x18f   : > { %1847 = vmatprep.subr.bf16.mxu0 %v1846_v48  ;;  %1875 = vmatprep.subr.bf16.mxu1 %v1846_v48  ;;  %v955_v30 = vpop.permute.xlu1 %954  ;;  %v1580_v14 = vld [vmem:[#allocation2 + $0x18] sm:$0xff] }
 0x190   : > { %1030 = vst.msk [vmem:[#allocation2 + $0xa8] sm:$0xff] %vm1008_vm7, %v955_v30  ;;  %v953_v31 = vpop.permute.xlu0 %952  ;;  %v1579_v9 = vld [vmem:[#allocation2 + $0x10] sm:$0xff] }
 0x191   : > { %1029 = vst.msk [vmem:[#allocation2 + $0xa0] sm:$0xff] %vm1008_vm7, %v953_v31  ;;  %1330 = vrot.lane.b32.xlu1 %v3621_v18, %s2046_s10  ;;  %v1848_v4 = vpack.c.bf16 %v1580_v14, %v1579_v9  ;;  %v3260_v9 = vld [vmem:[%s2165_s30 + $0x188] sm:$0xff] }
 0x192   : > { %1328 = vrot.lane.b32.xlu0 %v3622_v37, %s2046_s10 }
 0x193   : > { %1849 = vmatpush3.bf16.xpose.msra.mxu0 %v1848_v4  ;;  %1883 = vmatpush3.bf16.xpose.msra.mxu1 %v1848_v4  ;;  %v923_v7 = vpop.permute.xlu1 %922  ;;  %v235_v4 = vld [vmem:[%s2165_s30 + $0x180] sm:$0xff] }
 0x194   : > { %1014 = vst.msk [vmem:[#allocation2 + $0x28] sm:$0xff] %vm1008_vm7, %v923_v7  ;;  %v921_v49 = vpop.permute.xlu0 %920 }
 0x195   : > { %1013 = vst.msk [vmem:[#allocation2 + $0x20] sm:$0xff] %vm1008_vm7, %v921_v49  ;;  %1496 = vrot.lane.b32.xlu1 %v2759_v62, %s2047_s11  ;;  %v907_v49 = vrot.slane %v235_v4, 1 }
 0x196   : > { %1494 = vrot.lane.b32.xlu0 %v2764_v59, %s2047_s11 }
 0x197   : > { %v1089_v3 = vpop.permute.xlu1 %1088 }
 0x198   : > { %1164 = vst.msk [vmem:[#allocation2 + $0xa8] sm:$0xff] %vm1142_vm8, %v1089_v3  ;;  %v1087_v46 = vpop.permute.xlu0 %1086 }
 0x199   : > { %1163 = vst.msk [vmem:[#allocation2 + $0xa0] sm:$0xff] %vm1142_vm8, %v1087_v46  ;;  %1464 = vrot.lane.b32.xlu1 %v3623_v47, %s2047_s11 }
 0x19a   : > { %1462 = vrot.lane.b32.xlu0 %v3624_v25, %s2047_s11 }
 0x19b   : > { %v1057_v35 = vpop.permute.xlu1 %1056 }
 0x19c   : > { %1148 = vst.msk [vmem:[#allocation2 + $0x28] sm:$0xff] %vm1142_vm8, %v1057_v35  ;;  %v1055_v29 = vpop.permute.xlu0 %1054 }
 0x19d   : > { %1147 = vst.msk [vmem:[#allocation2 + $0x20] sm:$0xff] %vm1142_vm8, %v1055_v29  ;;  %831 = vrot.lane.b32.xlu1 %v2371_v58, %s2042_s6 }
 0x19e   : > { %829 = vrot.lane.b32.xlu0 %v3618_v53, %s2042_s6 }
 0x19f   : > { %v1220_v22 = vpop.permute.xlu1 %1219 }
 0x1a0   : > { %1295 = vst.msk [vmem:[#allocation2 + $0xa8] sm:$0xff] %vm1273_vm9, %v1220_v22  ;;  %v1218_v39 = vpop.permute.xlu0 %1217 }
 0x1a1   : > { %1294 = vst.msk [vmem:[#allocation2 + $0xa0] sm:$0xff] %vm1273_vm9, %v1218_v39  ;;  %966 = vrot.lane.b32.xlu1 %v3619_v2, %s2043_s7 }
 0x1a2   : > { %964 = vrot.lane.b32.xlu0 %v3620_v21, %s2043_s7 }
 0x1a3   : > { %v1188_v44 = vpop.permute.xlu1 %1187 }
 0x1a4   : > { %1279 = vst.msk [vmem:[#allocation2 + $0x28] sm:$0xff] %vm1273_vm9, %v1188_v44  ;;  %v1186_v5 = vpop.permute.xlu0 %1185 }
 0x1a5   : > { %1278 = vst.msk [vmem:[#allocation2 + $0x20] sm:$0xff] %vm1273_vm9, %v1186_v5  ;;  %934 = vrot.lane.b32.xlu1 %v3621_v18, %s2043_s7  ;;  %v1041_v5 = vrot.slane %v235_v4, 2 }
 0x1a6   : > { %932 = vrot.lane.b32.xlu0 %v3622_v37, %s2043_s7  ;;  %v908_v37 = vrot.slane %v3260_v9, 1 }
 0x1a7   : > { %v1355_v58 = vpop.permute.xlu1 %1354 }
 0x1a8   : > { %1430 = vst.msk [vmem:[#allocation2 + $0xa8] sm:$0xff] %vm1408_vm10, %v1355_v58  ;;  %v1353_v26 = vpop.permute.xlu0 %1352  ;;  %v909_v35 = vsel %vm355_vm2, %v907_v49, %v908_v37 }
 0x1a9   : > { %1429 = vst.msk [vmem:[#allocation2 + $0xa0] sm:$0xff] %vm1408_vm10, %v1353_v26  ;;  %1100 = vrot.lane.b32.xlu1 %v2759_v62, %s2044_s8 }
 0x1aa   : > { %1098 = vrot.lane.b32.xlu0 %v2764_v59, %s2044_s8 }
 0x1ab   : > { %v1323_v6 = vpop.permute.xlu1 %1322 }
 0x1ac   : > { %1414 = vst.msk [vmem:[#allocation2 + $0x28] sm:$0xff] %vm1408_vm10, %v1323_v6  ;;  %v1321_v28 = vpop.permute.xlu0 %1320 }
 0x1ad   : > { %1413 = vst.msk [vmem:[#allocation2 + $0x20] sm:$0xff] %vm1408_vm10, %v1321_v28  ;;  %1068 = vrot.lane.b32.xlu1 %v3623_v47, %s2044_s8 }
 0x1ae   : > { %1066 = vrot.lane.b32.xlu0 %v3624_v25, %s2044_s8 }
 0x1af   : > { %v1489_v27 = vpop.permute.xlu1 %1488 }
 0x1b0   : > { %1564 = vst.msk [vmem:[#allocation2 + $0xa8] sm:$0xff] %vm1542_vm11, %v1489_v27  ;;  %v1487_v36 = vpop.permute.xlu0 %1486  ;;  %v3631_v27 = vld [vmem:[#allocation19_spill] sm:$0xff] }
 0x1b1   : > { %1563 = vst.msk [vmem:[#allocation2 + $0xa0] sm:$0xff] %vm1542_vm11, %v1487_v36  ;;  %1231 = vrot.lane.b32.xlu1 %v2386_v63, %s2045_s9 }
 0x1b2   : > { %1229 = vrot.lane.b32.xlu0 %v2389_v0, %s2045_s9 }
 0x1b3   : > { %v1457_v59 = vpop.permute.xlu1 %1456 }
 0x1b4   : > { %1548 = vst.msk [vmem:[#allocation2 + $0x28] sm:$0xff] %vm1542_vm11, %v1457_v59  ;;  %v1455_v62 = vpop.permute.xlu0 %1454  ;;  %v3632_v59 = vld [vmem:[#allocation20_spill] sm:$0xff] }
 0x1b5   : > { %1547 = vst.msk [vmem:[#allocation2 + $0x20] sm:$0xff] %vm1542_vm11, %v1455_v62  ;;  %1199 = vrot.lane.b32.xlu1 %v2268_v32, %s2045_s9 }
 0x1b6   : > { %1197 = vrot.lane.b32.xlu0 %v2271_v33, %s2045_s9 }
 0x1b7   : > { %v824_v50 = vpop.permute.xlu1 %823  ;;  %v1598_v16 = vld [vmem:[#allocation2 + $0xa8] sm:$0xff] }
 0x1b8   : > { %897 = vst.msk [vmem:[#allocation2 + $0xb8] sm:$0xff] %vm873_vm6, %v824_v50  ;;  %v822_v20 = vpop.permute.xlu0 %821  ;;  %v1597_v24 = vld [vmem:[#allocation2 + $0xa0] sm:$0xff] }
 0x1b9   : > { %896 = vst.msk [vmem:[#allocation2 + $0xb0] sm:$0xff] %vm873_vm6, %v822_v20  ;;  %1366 = vrot.lane.b32.xlu1 %v3625_v45, %s2046_s10  ;;  %v1850_v12 = vpack.c.bf16 %v1598_v16, %v1597_v24 }
 0x1ba   : > { %1364 = vrot.lane.b32.xlu0 %v3626_v13, %s2046_s10 }
 0x1bb   : > { %1851 = vmatprep.subr.bf16.mxu0 %v1850_v12  ;;  %1876 = vmatprep.subr.bf16.mxu1 %v1850_v12  ;;  %v959_v32 = vpop.permute.xlu1 %958  ;;  %v1582_v56 = vld [vmem:[#allocation2 + $0x28] sm:$0xff]  ;;  %v3633_v12 = vld [vmem:[#allocation37_spill] sm:$0xff] }
 0x1bc   : > { %1032 = vst.msk [vmem:[#allocation2 + $0xb8] sm:$0xff] %vm1008_vm7, %v959_v32  ;;  %v957_v33 = vpop.permute.xlu0 %956  ;;  %v1581_v57 = vld [vmem:[#allocation2 + $0x20] sm:$0xff] }
 0x1bd   : > { %1031 = vst.msk [vmem:[#allocation2 + $0xb0] sm:$0xff] %vm1008_vm7, %v957_v33  ;;  %1334 = vrot.lane.b32.xlu1 %v3627_v60, %s2046_s10  ;;  %v1852_v17 = vpack.c.bf16 %v1582_v56, %v1581_v57 }
 0x1be   : > { %1332 = vrot.lane.b32.xlu0 %v3628_v19, %s2046_s10 }
 0x1bf   : > { %1853 = vmatpush3.bf16.xpose.msra.mxu0 %v1852_v17  ;;  %1884 = vmatpush3.bf16.xpose.msra.mxu1 %v1852_v17  ;;  %v927_v55 = vpop.permute.xlu1 %926 }
 0x1c0   : > { %1016 = vst.msk [vmem:[#allocation2 + $0x38] sm:$0xff] %vm1008_vm7, %v927_v55  ;;  %v925_v53 = vpop.permute.xlu0 %924 }
 0x1c1   : > { %1015 = vst.msk [vmem:[#allocation2 + $0x30] sm:$0xff] %vm1008_vm7, %v925_v53  ;;  %1500 = vrot.lane.b32.xlu1 %v2774_v40, %s2047_s11 }
 0x1c2   : > { %1498 = vrot.lane.b32.xlu0 %v2777_v11, %s2047_s11 }
 0x1c3   : > { %v1093_v23 = vpop.permute.xlu1 %1092 }
 0x1c4   : > { %1166 = vst.msk [vmem:[#allocation2 + $0xb8] sm:$0xff] %vm1142_vm8, %v1093_v23  ;;  %v1091_v34 = vpop.permute.xlu0 %1090 }
 0x1c5   : > { %1165 = vst.msk [vmem:[#allocation2 + $0xb0] sm:$0xff] %vm1142_vm8, %v1091_v34  ;;  %1468 = vrot.lane.b32.xlu1 %v3629_v15, %s2047_s11  ;;  %v239_v34 = vld [vmem:[%s2165_s30 + $0x1a0] sm:$0xff] }
 0x1c6   : > { %1466 = vrot.lane.b32.xlu0 %v3630_v1, %s2047_s11 }
 0x1c7   : > { %v1061_v51 = vpop.permute.xlu1 %1060 }
 0x1c8   : > { %1150 = vst.msk [vmem:[#allocation2 + $0x38] sm:$0xff] %vm1142_vm8, %v1061_v51  ;;  %v1059_v52 = vpop.permute.xlu0 %1058  ;;  %v240_v51 = vld [vmem:[%s2165_s30 + $0x1a8] sm:$0x3] }
 0x1c9   : > { %1149 = vst.msk [vmem:[#allocation2 + $0x30] sm:$0xff] %vm1142_vm8, %v1059_v52  ;;  %835 = vrot.lane.b32.xlu1 %v2386_v63, %s2042_s6 }
 0x1ca   : > { %833 = vrot.lane.b32.xlu0 %v2389_v0, %s2042_s6 }
 0x1cb   : > { %v1224_v2 = vpop.permute.xlu1 %1223 }
 0x1cc   : > { %1297 = vst.msk [vmem:[#allocation2 + $0xb8] sm:$0xff] %vm1273_vm9, %v1224_v2  ;;  %v1222_v48 = vpop.permute.xlu0 %1221  ;;  %v1308_v2 = vrot.slane %v239_v34, 1 }
 0x1cd   : > { %1296 = vst.msk [vmem:[#allocation2 + $0xb0] sm:$0xff] %vm1273_vm9, %v1222_v48  ;;  %970 = vrot.lane.b32.xlu1 %v3625_v45, %s2043_s7  ;;  %v1310_v48 = vrot.slane %v240_v51, 1 }
 0x1ce   : > { %968 = vrot.lane.b32.xlu0 %v3626_v13, %s2043_s7  ;;  %v3634_v13 = vld [vmem:[#allocation38_spill] sm:$0xff] }
 0x1cf   : > { %v1192_v21 = vpop.permute.xlu1 %1191 }
 0x1d0   : > { %1281 = vst.msk [vmem:[#allocation2 + $0x38] sm:$0xff] %vm1273_vm9, %v1192_v21  ;;  %v1190_v30 = vpop.permute.xlu0 %1189 }
 0x1d1   : > { %1280 = vst.msk [vmem:[#allocation2 + $0x30] sm:$0xff] %vm1273_vm9, %v1190_v30  ;;  %938 = vrot.lane.b32.xlu1 %v3627_v60, %s2043_s7 }
 0x1d2   : > { %936 = vrot.lane.b32.xlu0 %v3628_v19, %s2043_s7 }
 0x1d3   : > { %v1359_v63 = vpop.permute.xlu1 %1358 }
 0x1d4   : > { %1432 = vst.msk [vmem:[#allocation2 + $0xb8] sm:$0xff] %vm1408_vm10, %v1359_v63  ;;  %v1357_v0 = vpop.permute.xlu0 %1356 }
 0x1d5   : > { %1431 = vst.msk [vmem:[#allocation2 + $0xb0] sm:$0xff] %vm1408_vm10, %v1357_v0  ;;  %1104 = vrot.lane.b32.xlu1 %v2774_v40, %s2044_s8  ;;  %v237_v40 = vld [vmem:[%s2165_s30 + $0x190] sm:$0x3]  ;;  %v1311_v0 = vsel %vm355_vm2, %v1308_v2, %v1310_v48 }
 0x1d6   : > { %1102 = vrot.lane.b32.xlu0 %v2777_v11, %s2044_s8  ;;  %v910_v7 = vrot.slane %v237_v40, 1 }
 0x1d7   : > { %v1327_v14 = vpop.permute.xlu1 %1326 }
 0x1d8   : > { %1416 = vst.msk [vmem:[#allocation2 + $0x38] sm:$0xff] %vm1408_vm10, %v1327_v14  ;;  %v1325_v31 = vpop.permute.xlu0 %1324  ;;  %v911_v47 = vsel %vm355_vm2, %v908_v37, %v910_v7 }
 0x1d9   : > { %1415 = vst.msk [vmem:[#allocation2 + $0x30] sm:$0xff] %vm1408_vm10, %v1325_v31  ;;  %1072 = vrot.lane.b32.xlu1 %v3629_v15, %s2044_s8 }
 0x1da   : > { %1070 = vrot.lane.b32.xlu0 %v3630_v1, %s2044_s8  ;;  %v238_v1 = vld [vmem:[%s2165_s30 + $0x198] sm:$0xff]  ;;  %s175_s30 = sand.u32 1, %s2021_s13  }
 0x1db   : > { %v1493_v18 = vpop.permute.xlu1 %1492  ;;  %v1307_v21 = vrot.slane %v238_v1, 1  ;;  %s1798_s4 = sshll.u32 %s175_s30, 5 }
 0x1dc   : > { %1566 = vst.msk [vmem:[#allocation2 + $0xb8] sm:$0xff] %vm1542_vm11, %v1493_v18  ;;  %v1491_v11 = vpop.permute.xlu0 %1490 }
 0x1dd   : > { %1565 = vst.msk [vmem:[#allocation2 + $0xb0] sm:$0xff] %vm1542_vm11, %v1491_v11  ;;  %1235 = vrot.lane.b32.xlu1 %v3260_v9, %s2045_s9  ;;  %v1309_v31 = vsel %vm355_vm2, %v1307_v21, %v1308_v2  ;;  %v1442_v11 = vrot.slane %v239_v34, 2 }
 0x1de   : > { %1233 = vrot.lane.b32.xlu0 %v235_v4, %s2045_s9 }
 0x1df   : > { %v1461_v3 = vpop.permute.xlu1 %1460 }
 0x1e0   : > { %1550 = vst.msk [vmem:[#allocation2 + $0x38] sm:$0xff] %vm1542_vm11, %v1461_v3  ;;  %v1459_v46 = vpop.permute.xlu0 %1458 }
 0x1e1   : > { %1549 = vst.msk [vmem:[#allocation2 + $0x30] sm:$0xff] %vm1542_vm11, %v1459_v46  ;;  %1203 = vrot.lane.b32.xlu1 %v2287_v38, %s2045_s9  ;;  %v1042_v38 = vrot.slane %v3260_v9, 2 }
 0x1e2   : > { %1201 = vrot.lane.b32.xlu0 %v2298_v41, %s2045_s9  ;;  %v1044_v41 = vrot.slane %v237_v40, 2 }
 0x1e3   : > { %v828_v25 = vpop.permute.xlu1 %827  ;;  %v1600_v29 = vld [vmem:[#allocation2 + $0xb8] sm:$0xff]  ;;  %v1043_v16 = vsel %vm565_vm3, %v1041_v5, %v1042_v38  ;;  %v1609_v5 = vld [vmem:[%s3499_s2] sm:$0xff] }
 0x1e4   : > { %899 = vst.msk [vmem:[#allocation2 + $0xc8] sm:$0xff] %vm873_vm6, %v828_v25  ;;  %v826_v22 = vpop.permute.xlu0 %825  ;;  %v1599_v39 = vld [vmem:[#allocation2 + $0xb0] sm:$0xff]  ;;  %v1045_v62 = vsel %vm565_vm3, %v1042_v38, %v1044_v41  ;;  %v1610_v41 = vld [vmem:[%s3499_s2 + $0x8] sm:$0xff] }
 0x1e5   : > { %898 = vst.msk [vmem:[#allocation2 + $0xc0] sm:$0xff] %vm873_vm6, %v826_v22  ;;  %1370 = vrot.lane.b32.xlu1 %v911_v47, %s2046_s10  ;;  %v1854_v44 = vpack.c.bf16 %v1600_v29, %v1599_v39  ;;  %v3365_v22 = vld [vmem:[%s3498_s1 + $0x8] sm:$0xff] }
 0x1e6   : > { %1368 = vrot.lane.b32.xlu0 %v909_v35, %s2046_s10  ;;  %1840 = vmatprep.mubr.f32.mxu1 %v3365_v22 }
 0x1e7   : > { %1855 = vmatprep.subr.bf16.mxu0 %v1854_v44  ;;  %1877 = vmatprep.subr.bf16.mxu1 %v1854_v44  ;;  %v963_v58 = vpop.permute.xlu1 %962  ;;  %v1584_v26 = vld [vmem:[#allocation2 + $0x38] sm:$0xff] }
 0x1e8   : > { %1034 = vst.msk [vmem:[#allocation2 + $0xc8] sm:$0xff] %vm1008_vm7, %v963_v58  ;;  %v961_v6 = vpop.permute.xlu0 %960  ;;  %v1583_v28 = vld [vmem:[#allocation2 + $0x30] sm:$0xff] }
 0x1e9   : > { %1033 = vst.msk [vmem:[#allocation2 + $0xc0] sm:$0xff] %vm1008_vm7, %v961_v6  ;;  %1338 = vrot.lane.b32.xlu1 %v3631_v27, %s2046_s10  ;;  %v1856_v36 = vpack.c.bf16 %v1584_v26, %v1583_v28  ;;  %v2048_v26 = vmov 0  }
 0x1ea   : > { %1336 = vrot.lane.b32.xlu0 %v3632_v59, %s2046_s10  ;;  %1958 = vset.pattern.permute.xlu1 %v2048_v26 }
 0x1eb   : > { %1857 = vmatpush3.bf16.xpose.msra.mxu0 %v1856_v36  ;;  %1885 = vmatpush3.bf16.xpose.msra.mxu1 %v1856_v36  ;;  %v931_v50 = vpop.permute.xlu1 %930 }
 0x1ec   : > { %1018 = vst.msk [vmem:[#allocation2 + $0x48] sm:$0xff] %vm1008_vm7, %v931_v50  ;;  %v929_v20 = vpop.permute.xlu0 %928  ;;  %1957 = vset.pattern.permute.xlu0 %v2048_v26 }
 0x1ed   : > { %1017 = vst.msk [vmem:[#allocation2 + $0x40] sm:$0xff] %vm1008_vm7, %v929_v20  ;;  %1504 = vrot.lane.b32.xlu1 %v1045_v62, %s2047_s11 }
 0x1ee   : > { %1502 = vrot.lane.b32.xlu0 %v1043_v16, %s2047_s11 }
 0x1ef   : > { %v1097_v24 = vpop.permute.xlu1 %1096 }
 0x1f0   : > { %1168 = vst.msk [vmem:[#allocation2 + $0xc8] sm:$0xff] %vm1142_vm8, %v1097_v24  ;;  %v1095_v45 = vpop.permute.xlu0 %1094 }
 0x1f1   : > { %1167 = vst.msk [vmem:[#allocation2 + $0xc0] sm:$0xff] %vm1142_vm8, %v1095_v45  ;;  %1472 = vrot.lane.b32.xlu1 %v3633_v12, %s2047_s11 }
 0x1f2   : > { %1470 = vrot.lane.b32.xlu0 %v3634_v13, %s2047_s11 }
 0x1f3   : > { %v1065_v32 = vpop.permute.xlu1 %1064 }
 0x1f4   : > { %1152 = vst.msk [vmem:[#allocation2 + $0x48] sm:$0xff] %vm1142_vm8, %v1065_v32  ;;  %v1063_v56 = vpop.permute.xlu0 %1062 }
 0x1f5   : > { %1151 = vst.msk [vmem:[#allocation2 + $0x40] sm:$0xff] %vm1142_vm8, %v1063_v56  ;;  %839 = vrot.lane.b32.xlu1 %v3260_v9, %s2042_s6 }
 0x1f6   : > { %837 = vrot.lane.b32.xlu0 %v235_v4, %s2042_s6  ;;  %s177_s6 = scalar_lea.vmem [#allocation3], %s1798_s4 }
 0x1f7   : > { %v1228_v33 = vpop.permute.xlu1 %1227 }
 0x1f8   : > { %1299 = vst.msk [vmem:[#allocation2 + $0xc8] sm:$0xff] %vm1273_vm9, %v1228_v33  ;;  %v1226_v57 = vpop.permute.xlu0 %1225 }
 0x1f9   : > { %1298 = vst.msk [vmem:[#allocation2 + $0xc0] sm:$0xff] %vm1273_vm9, %v1226_v57  ;;  %974 = vrot.lane.b32.xlu1 %v911_v47, %s2043_s7 }
 0x1fa   : > { %972 = vrot.lane.b32.xlu0 %v909_v35, %s2043_s7 }
 0x1fb   : > { %v1196_v60 = vpop.permute.xlu1 %1195 }
 0x1fc   : > { %1283 = vst.msk [vmem:[#allocation2 + $0x48] sm:$0xff] %vm1273_vm9, %v1196_v60  ;;  %v1194_v17 = vpop.permute.xlu0 %1193 }
 0x1fd   : > { %1282 = vst.msk [vmem:[#allocation2 + $0x40] sm:$0xff] %vm1273_vm9, %v1194_v17  ;;  %942 = vrot.lane.b32.xlu1 %v3631_v27, %s2043_s7 }
 0x1fe   : > { %940 = vrot.lane.b32.xlu0 %v3632_v59, %s2043_s7  ;;  %s1718_s7 = sshll.u32 %s177_s6, 4  ;;  %s3443_s7 = int_to_ptr.vmem [resolvable:$true] %s1718_s7 }
 0x1ff   : > { %v1363_v19 = vpop.permute.xlu1 %1362  ;;  %s1959_s18 = scalar_lea.vmem %s3443_s7, 512  ;;  %p1966_p1 = scmp.lt.s32.totalorder %s3443_s7, %s1964_s21 }
 0x200   : > { %1434 = vst.msk [vmem:[#allocation2 + $0xc8] sm:$0xff] %vm1408_vm10, %v1363_v19  ;;  %v1361_v55 = vpop.permute.xlu0 %1360  ;;  %p1960_p12 = scmp.ne.s32.totalorder %s3443_s7, %s1959_s18  ;;  %p1967_p2 = scmp.lt.s32.totalorder %s1965_s23, %s1959_s18 }
 0x201   : > { %1433 = vst.msk [vmem:[#allocation2 + $0xc0] sm:$0xff] %vm1408_vm10, %v1361_v55  ;;  %1108 = vrot.lane.b32.xlu1 %v1045_v62, %s2044_s8 }
 0x202   : > { %1106 = vrot.lane.b32.xlu0 %v1043_v16, %s2044_s8  ;;  %p1961_p13 = pnand %p1960_p12, %p2111_p4  ;;  %p1968_p3 = por %p1967_p2, %p1966_p1 }
 0x203   : > { %v1331_v53 = vpop.permute.xlu1 %1330 }
 0x204   : > { %1418 = vst.msk [vmem:[#allocation2 + $0x48] sm:$0xff] %vm1408_vm10, %v1331_v53  ;;  %v1329_v23 = vpop.permute.xlu0 %1328  ;;  %p1962_p0 = pneg %p1961_p13 }
 0x205   : > { %1417 = vst.msk [vmem:[#allocation2 + $0x40] sm:$0xff] %vm1408_vm10, %v1329_v23  ;;  %1076 = vrot.lane.b32.xlu1 %v3633_v12, %s2044_s8 }
 0x206   : > { %1074 = vrot.lane.b32.xlu0 %v3634_v13, %s2044_s8  ;;  %s1805_s8 = sshll.u32 %s2029_s15, 9  ;;  %s3450_s15 = scalar_lea.sflag [#allocation4], %s175_s30 }
 0x207   : > { %v1497_v15 = vpop.permute.xlu1 %1496  ;;  %p1969_p5 = pnand %p1968_p3, %p1962_p0 }
 0x208   : > { %1568 = vst.msk [vmem:[#allocation2 + $0xc8] sm:$0xff] %vm1542_vm11, %v1497_v15  ;;  %v1495_v52 = vpop.permute.xlu0 %1494 }
 0x209   : > { %1567 = vst.msk [vmem:[#allocation2 + $0xc0] sm:$0xff] %vm1542_vm11, %v1495_v52  ;;  %1239 = vrot.lane.b32.xlu1 %v239_v34, %s2045_s9 }
 0x20a   : > { %1237 = vrot.lane.b32.xlu0 %v238_v1, %s2045_s9 }
 0x20b   : > { %v1465_v30 = vpop.permute.xlu1 %1464 }
 0x20c   : > { %1552 = vst.msk [vmem:[#allocation2 + $0x48] sm:$0xff] %vm1542_vm11, %v1465_v30  ;;  %v1463_v63 = vpop.permute.xlu0 %1462 }
 0x20d   : > { %1551 = vst.msk [vmem:[#allocation2 + $0x40] sm:$0xff] %vm1542_vm11, %v1463_v63  ;;  %1207 = vrot.lane.b32.xlu1 %v2301_v42, %s2045_s9  ;;  %v1444_v42 = vrot.slane %v240_v51, 2 }
 0x20e   : > { %1205 = vrot.lane.b32.xlu0 %v2304_v43, %s2045_s9  ;;  %v1441_v43 = vrot.slane %v238_v1, 2 }
 0x20f   : > { %v832_v14 = vpop.permute.xlu1 %831  ;;  %v1602_v9 = vld [vmem:[#allocation2 + $0xc8] sm:$0xff]  ;;  %v1445_v47 = vsel %vm565_vm3, %v1442_v11, %v1444_v42 }
 0x210   : > { %901 = vst.msk [vmem:[#allocation2 + $0xd8] sm:$0xff] %vm873_vm6, %v832_v14  ;;  %v830_v18 = vpop.permute.xlu0 %829  ;;  %v1601_v4 = vld [vmem:[#allocation2 + $0xc0] sm:$0xff]  ;;  %v1443_v35 = vsel %vm565_vm3, %v1441_v43, %v1442_v11 }
 0x211   : > { %900 = vst.msk [vmem:[#allocation2 + $0xd0] sm:$0xff] %vm873_vm6, %v830_v18  ;;  %1374 = vrot.lane.b32.xlu1 %v1311_v0, %s2046_s10  ;;  %v1858_v40 = vpack.c.bf16 %v1602_v9, %v1601_v4 }
 0x212   : > { %1372 = vrot.lane.b32.xlu0 %v1309_v31, %s2046_s10 }
 0x213   : > { %1859 = vmatprep.subr.bf16.mxu0 %v1858_v40  ;;  %1878 = vmatprep.subr.bf16.mxu1 %v1858_v40  ;;  %v967_v37 = vpop.permute.xlu1 %966  ;;  %v1586_v7 = vld [vmem:[#allocation2 + $0x48] sm:$0xff] }
 0x214   : > { %1036 = vst.msk [vmem:[#allocation2 + $0xd8] sm:$0xff] %vm1008_vm7, %v967_v37  ;;  %v965_v49 = vpop.permute.xlu0 %964  ;;  %v1585_v3 = vld [vmem:[#allocation2 + $0x40] sm:$0xff] }
 0x215   : > { %1035 = vst.msk [vmem:[#allocation2 + $0xd0] sm:$0xff] %vm1008_vm7, %v965_v49  ;;  %1342 = vrot.lane.b32.xlu1 %v2475_v61, %s2046_s10  ;;  %v1860_v46 = vpack.c.bf16 %v1586_v7, %v1585_v3 }
 0x216   : > { %1340 = vrot.lane.b32.xlu0 %v2480_v54, %s2046_s10  ;;  %v3360_v54 = vld [vmem:[%s3498_s1] sm:$0xff] }
 0x217   : > { %1861 = vmatpush3.bf16.xpose.msra.mxu0 %v1860_v46  ;;  %1886 = vmatpush3.bf16.xpose.msra.mxu1 %v1860_v46  ;;  %v935_v25 = vpop.permute.xlu1 %934 }
 0x218   : > { %1020 = vst.msk [vmem:[#allocation2 + $0x58] sm:$0xff] %vm1008_vm7, %v935_v25  ;;  %v933_v29 = vpop.permute.xlu0 %932  ;;  %1838 = vmatprep.mubr.f32.mxu0 %v3360_v54 }
 0x219   : > { %1019 = vst.msk [vmem:[#allocation2 + $0x50] sm:$0xff] %vm1008_vm7, %v933_v29  ;;  %1508 = vrot.lane.b32.xlu1 %v1445_v47, %s2047_s11 }
 0x21a   : > { %1506 = vrot.lane.b32.xlu0 %v1443_v35, %s2047_s11 }
 0x21b   : > { %v1101_v61 = vpop.permute.xlu1 %1100 }
 0x21c   : > { %1170 = vst.msk [vmem:[#allocation2 + $0xd8] sm:$0xff] %vm1142_vm8, %v1101_v61  ;;  %v1099_v39 = vpop.permute.xlu0 %1098 }
 0x21d   : > { %1169 = vst.msk [vmem:[#allocation2 + $0xd0] sm:$0xff] %vm1142_vm8, %v1099_v39  ;;  %1476 = vrot.lane.b32.xlu1 %v2692_v8, %s2047_s11 }
 0x21e   : > { %1474 = vrot.lane.b32.xlu0 %v2697_v10, %s2047_s11  ;;  %s3448_s11 = scalar_lea.hbm %s3500_s3, %s1805_s8 }
 0x21f   : > { %v1069_v44 = vpop.permute.xlu1 %1068 }
 0x220   : > { %1154 = vst.msk [vmem:[#allocation2 + $0x58] sm:$0xff] %vm1142_vm8, %v1069_v44  ;;  %v1067_v38 = vpop.permute.xlu0 %1066 }
 0x221   : > { %1153 = vst.msk [vmem:[#allocation2 + $0x50] sm:$0xff] %vm1142_vm8, %v1067_v38  ;;  %1618 = vperm.xlu1 %1958, %v1610_v41  }
 0x222   : > { %1613 = vperm.xlu0 %1957, %v1609_v5  }
 0x223   : > { %v1232_v58 = vpop.permute.xlu1 %1231 }
 0x224   : > { %1301 = vst.msk [vmem:[#allocation2 + $0xd8] sm:$0xff] %vm1273_vm9, %v1232_v58  ;;  %v1230_v8 = vpop.permute.xlu0 %1229 }
 0x225   : > { %1300 = vst.msk [vmem:[#allocation2 + $0xd0] sm:$0xff] %vm1273_vm9, %v1230_v8 }
 0x227   : > { %v1200_v10 = vpop.permute.xlu1 %1199 }
 0x228   : > { %1285 = vst.msk [vmem:[#allocation2 + $0x58] sm:$0xff] %vm1273_vm9, %v1200_v10  ;;  %v1198_v6 = vpop.permute.xlu0 %1197 }
 0x229   : > { %1284 = vst.msk [vmem:[#allocation2 + $0x50] sm:$0xff] %vm1273_vm9, %v1198_v6 }
 0x22b   : > { %v1367_v28 = vpop.permute.xlu1 %1366 }
 0x22c   : > { %1436 = vst.msk [vmem:[#allocation2 + $0xd8] sm:$0xff] %vm1408_vm10, %v1367_v28  ;;  %v1365_v27 = vpop.permute.xlu0 %1364 }
 0x22d   : > { %1435 = vst.msk [vmem:[#allocation2 + $0xd0] sm:$0xff] %vm1408_vm10, %v1365_v27 }
 0x22f   : > { %v1335_v36 = vpop.permute.xlu1 %1334 }
 0x230   : > { %1420 = vst.msk [vmem:[#allocation2 + $0x58] sm:$0xff] %vm1408_vm10, %v1335_v36  ;;  %v1333_v59 = vpop.permute.xlu0 %1332 }
 0x231   : > { %1419 = vst.msk [vmem:[#allocation2 + $0x50] sm:$0xff] %vm1408_vm10, %v1333_v59 }
 0x233   : > { %v1501_v62 = vpop.permute.xlu1 %1500 }
 0x234   : > { %1570 = vst.msk [vmem:[#allocation2 + $0xd8] sm:$0xff] %vm1542_vm11, %v1501_v62  ;;  %v1499_v50 = vpop.permute.xlu0 %1498 }
 0x235   : > { %1569 = vst.msk [vmem:[#allocation2 + $0xd0] sm:$0xff] %vm1542_vm11, %v1499_v50 }
 0x237   : > { %v1469_v16 = vpop.permute.xlu1 %1468 }
 0x238   : > { %1554 = vst.msk [vmem:[#allocation2 + $0x58] sm:$0xff] %vm1542_vm11, %v1469_v16  ;;  %v1467_v20 = vpop.permute.xlu0 %1466 }
 0x239   : > { %1553 = vst.msk [vmem:[#allocation2 + $0x50] sm:$0xff] %vm1542_vm11, %v1467_v20 }
 0x23b   : > { %v836_v24 = vpop.permute.xlu1 %835  ;;  %v1604_v45 = vld [vmem:[#allocation2 + $0xd8] sm:$0xff] }
 0x23c   : > { %903 = vst.msk [vmem:[#allocation2 + $0xe8] sm:$0xff] %vm873_vm6, %v836_v24  ;;  %v834_v12 = vpop.permute.xlu0 %833  ;;  %v1603_v13 = vld [vmem:[#allocation2 + $0xd0] sm:$0xff] }
 0x23d   : > { %902 = vst.msk [vmem:[#allocation2 + $0xe0] sm:$0xff] %vm873_vm6, %v834_v12  ;;  %v1862_v32 = vpack.c.bf16 %v1604_v45, %v1603_v13 }
 0x23f   : > { %1863 = vmatprep.subr.bf16.mxu0 %v1862_v32  ;;  %1879 = vmatprep.subr.bf16.mxu1 %v1862_v32  ;;  %v971_v56 = vpop.permute.xlu1 %970  ;;  %v1588_v33 = vld [vmem:[#allocation2 + $0x58] sm:$0xff] }
 0x240   : > { %1038 = vst.msk [vmem:[#allocation2 + $0xe8] sm:$0xff] %vm1008_vm7, %v971_v56  ;;  %v969_v57 = vpop.permute.xlu0 %968  ;;  %v1587_v60 = vld [vmem:[#allocation2 + $0x50] sm:$0xff] }
 0x241   : > { %1037 = vst.msk [vmem:[#allocation2 + $0xe0] sm:$0xff] %vm1008_vm7, %v969_v57  ;;  %v1864_v17 = vpack.c.bf16 %v1588_v33, %v1587_v60 }
 0x243   : > { %1865 = vmatpush3.bf16.xpose.msra.mxu0 %v1864_v17  ;;  %1887 = vmatpush3.bf16.xpose.msra.mxu1 %v1864_v17  ;;  %v939_v19 = vpop.permute.xlu1 %938 }
 0x244   : > { %1022 = vst.msk [vmem:[#allocation2 + $0x68] sm:$0xff] %vm1008_vm7, %v939_v19  ;;  %v937_v55 = vpop.permute.xlu0 %936 }
 0x245   : > { %1021 = vst.msk [vmem:[#allocation2 + $0x60] sm:$0xff] %vm1008_vm7, %v937_v55 }
 0x247   : > { %v1105_v53 = vpop.permute.xlu1 %1104 }
 0x248   : > { %1172 = vst.msk [vmem:[#allocation2 + $0xe8] sm:$0xff] %vm1142_vm8, %v1105_v53  ;;  %v1103_v23 = vpop.permute.xlu0 %1102 }
 0x249   : > { %1171 = vst.msk [vmem:[#allocation2 + $0xe0] sm:$0xff] %vm1142_vm8, %v1103_v23 }
 0x24b   : > { %v1073_v34 = vpop.permute.xlu1 %1072 }
 0x24c   : > { %1156 = vst.msk [vmem:[#allocation2 + $0x68] sm:$0xff] %vm1142_vm8, %v1073_v34  ;;  %v1071_v15 = vpop.permute.xlu0 %1070 }
 0x24d   : > { %1155 = vst.msk [vmem:[#allocation2 + $0x60] sm:$0xff] %vm1142_vm8, %v1071_v15 }
 0x24f   : > { %v1236_v1 = vpop.permute.xlu1 %1235 }
 0x250   : > { %1303 = vst.msk [vmem:[#allocation2 + $0xe8] sm:$0xff] %vm1273_vm9, %v1236_v1  ;;  %v1234_v51 = vpop.permute.xlu0 %1233 }
 0x251   : > { %1302 = vst.msk [vmem:[#allocation2 + $0xe0] sm:$0xff] %vm1273_vm9, %v1234_v51 }
 0x253   : > { %v1204_v52 = vpop.permute.xlu1 %1203 }
 0x254   : > { %1287 = vst.msk [vmem:[#allocation2 + $0x68] sm:$0xff] %vm1273_vm9, %v1204_v52  ;;  %v1202_v2 = vpop.permute.xlu0 %1201 }
 0x255   : > { %1286 = vst.msk [vmem:[#allocation2 + $0x60] sm:$0xff] %vm1273_vm9, %v1202_v2 }
 0x257   : > { %v1371_v48 = vpop.permute.xlu1 %1370 }
 0x258   : > { %1438 = vst.msk [vmem:[#allocation2 + $0xe8] sm:$0xff] %vm1408_vm10, %v1371_v48  ;;  %v1369_v21 = vpop.permute.xlu0 %1368 }
 0x259   : > { %1437 = vst.msk [vmem:[#allocation2 + $0xe0] sm:$0xff] %vm1408_vm10, %v1369_v21 }
 0x25b   : > { %v1339_v30 = vpop.permute.xlu1 %1338 }
 0x25c   : > { %1422 = vst.msk [vmem:[#allocation2 + $0x68] sm:$0xff] %vm1408_vm10, %v1339_v30  ;;  %v1337_v63 = vpop.permute.xlu0 %1336 }
 0x25d   : > { %1421 = vst.msk [vmem:[#allocation2 + $0x60] sm:$0xff] %vm1408_vm10, %v1337_v63 }
 0x25f   : > { %v1505_v0 = vpop.permute.xlu1 %1504 }
 0x260   : > { %1572 = vst.msk [vmem:[#allocation2 + $0xe8] sm:$0xff] %vm1542_vm11, %v1505_v0  ;;  %v1503_v14 = vpop.permute.xlu0 %1502 }
 0x261   : > { %1571 = vst.msk [vmem:[#allocation2 + $0xe0] sm:$0xff] %vm1542_vm11, %v1503_v14 }
 0x263   : > { %v1473_v31 = vpop.permute.xlu1 %1472 }
 0x264   : > { %1556 = vst.msk [vmem:[#allocation2 + $0x68] sm:$0xff] %vm1542_vm11, %v1473_v31  ;;  %v1471_v9 = vpop.permute.xlu0 %1470 }
 0x265   : > { %1555 = vst.msk [vmem:[#allocation2 + $0x60] sm:$0xff] %vm1542_vm11, %v1471_v9 }
 0x267   : > { %v840_v18 = vpop.permute.xlu1 %839  ;;  %v1606_v4 = vld [vmem:[#allocation2 + $0xe8] sm:$0xff] }
 0x268   : > { %905 = vst.msk [vmem:[#allocation2 + $0xf8] sm:$0xff] %vm873_vm6, %v840_v18  ;;  %v838_v40 = vpop.permute.xlu0 %837  ;;  %v1605_v11 = vld [vmem:[#allocation2 + $0xe0] sm:$0xff] }
 0x269   : > { %904 = vst.msk [vmem:[#allocation2 + $0xf0] sm:$0xff] %vm873_vm6, %v838_v40  ;;  %v1866_v42 = vpack.c.bf16 %v1606_v4, %v1605_v11 }
 0x26b   : > { %1867 = vmatprep.subr.bf16.mxu0 %v1866_v42  ;;  %1880 = vmatprep.subr.bf16.mxu1 %v1866_v42  ;;  %v975_v43 = vpop.permute.xlu1 %974  ;;  %v1590_v37 = vld [vmem:[#allocation2 + $0x68] sm:$0xff] }
 0x26c   : > { %1040 = vst.msk [vmem:[#allocation2 + $0xf8] sm:$0xff] %vm1008_vm7, %v975_v43  ;;  %v973_v7 = vpop.permute.xlu0 %972  ;;  %v1589_v49 = vld [vmem:[#allocation2 + $0x60] sm:$0xff] }
 0x26d   : > { %1039 = vst.msk [vmem:[#allocation2 + $0xf0] sm:$0xff] %vm1008_vm7, %v973_v7  ;;  %v1868_v3 = vpack.c.bf16 %v1590_v37, %v1589_v49 }
 0x26f   : > { %1869 = vmatpush3.bf16.xpose.msra.mxu0 %v1868_v3  ;;  %1888 = vmatpush3.bf16.xpose.msra.mxu1 %v1868_v3  ;;  %v943_v46 = vpop.permute.xlu1 %942 }
 0x270   : > { %1024 = vst.msk [vmem:[#allocation2 + $0x78] sm:$0xff] %vm1008_vm7, %v943_v46  ;;  %v941_v47 = vpop.permute.xlu0 %940 }
 0x271   : > { %1023 = vst.msk [vmem:[#allocation2 + $0x70] sm:$0xff] %vm1008_vm7, %v941_v47 }
 0x273   : > { %v1109_v25 = vpop.permute.xlu1 %1108 }
 0x274   : > { %1174 = vst.msk [vmem:[#allocation2 + $0xf8] sm:$0xff] %vm1142_vm8, %v1109_v25  ;;  %v1107_v35 = vpop.permute.xlu0 %1106 }
 0x275   : > { %1173 = vst.msk [vmem:[#allocation2 + $0xf0] sm:$0xff] %vm1142_vm8, %v1107_v35 }
 0x277   : > { %v1077_v29 = vpop.permute.xlu1 %1076 }
 0x278   : > { %1158 = vst.msk [vmem:[#allocation2 + $0x78] sm:$0xff] %vm1142_vm8, %v1077_v29  ;;  %v1075_v61 = vpop.permute.xlu0 %1074 }
 0x279   : > { %1157 = vst.msk [vmem:[#allocation2 + $0x70] sm:$0xff] %vm1142_vm8, %v1075_v61 }
 0x27b   : > { %v1240_v39 = vpop.permute.xlu1 %1239 }
 0x27c   : > { %1305 = vst.msk [vmem:[#allocation2 + $0xf8] sm:$0xff] %vm1273_vm9, %v1240_v39  ;;  %v1238_v44 = vpop.permute.xlu0 %1237 }
 0x27d   : > { %1304 = vst.msk [vmem:[#allocation2 + $0xf0] sm:$0xff] %vm1273_vm9, %v1238_v44 }
 0x27f   : > { %v1208_v38 = vpop.permute.xlu1 %1207 }
 0x280   : > { %1289 = vst.msk [vmem:[#allocation2 + $0x78] sm:$0xff] %vm1273_vm9, %v1208_v38  ;;  %v1206_v41 = vpop.permute.xlu0 %1205 }
 0x281   : > { %1288 = vst.msk [vmem:[#allocation2 + $0x70] sm:$0xff] %vm1273_vm9, %v1206_v41 }
 0x283   : > { %v1375_v5 = vpop.permute.xlu1 %1374 }
 0x284   : > { %1440 = vst.msk [vmem:[#allocation2 + $0xf8] sm:$0xff] %vm1408_vm10, %v1375_v5  ;;  %v1373_v58 = vpop.permute.xlu0 %1372 }
 0x285   : > { %1439 = vst.msk [vmem:[#allocation2 + $0xf0] sm:$0xff] %vm1408_vm10, %v1373_v58 }
 0x287   : > { %v1343_v26 = vpop.permute.xlu1 %1342 }
 0x288   : > { %1424 = vst.msk [vmem:[#allocation2 + $0x78] sm:$0xff] %vm1408_vm10, %v1343_v26  ;;  %v1341_v8 = vpop.permute.xlu0 %1340 }
 0x289   : > { %1423 = vst.msk [vmem:[#allocation2 + $0x70] sm:$0xff] %vm1408_vm10, %v1341_v8 }
 0x28b   : > { %v1509_v10 = vpop.permute.xlu1 %1508 }
 0x28c   : > { %1574 = vst.msk [vmem:[#allocation2 + $0xf8] sm:$0xff] %vm1542_vm11, %v1509_v10  ;;  %v1507_v6 = vpop.permute.xlu0 %1506 }
 0x28d   : > { %1573 = vst.msk [vmem:[#allocation2 + $0xf0] sm:$0xff] %vm1542_vm11, %v1507_v6 }
 0x28f   : > { %v1477_v28 = vpop.permute.xlu1 %1476 }
 0x290   : > { %1558 = vst.msk [vmem:[#allocation2 + $0x78] sm:$0xff] %vm1542_vm11, %v1477_v28  ;;  %v1475_v27 = vpop.permute.xlu0 %1474 }
 0x291   : > { %1557 = vst.msk [vmem:[#allocation2 + $0x70] sm:$0xff] %vm1542_vm11, %v1475_v27 }
 0x293   : > { %v1608_v36 = vld [vmem:[#allocation2 + $0xf8] sm:$0xff] }
 0x294   : > { %v1607_v59 = vld [vmem:[#allocation2 + $0xf0] sm:$0xff] }
 0x295   : > { %v1870_v62 = vpack.c.bf16 %v1608_v36, %v1607_v59 }
 0x297   : > { %1871 = vmatprep.subr.bf16.mxu0 %v1870_v62  ;;  %1881 = vmatprep.subr.bf16.mxu1 %v1870_v62  ;;  %v1592_v50 = vld [vmem:[#allocation2 + $0x78] sm:$0xff] }
 0x298   : > { %v1591_v16 = vld [vmem:[#allocation2 + $0x70] sm:$0xff] }
 0x299   : > { %v1872_v20 = vpack.c.bf16 %v1592_v50, %v1591_v16 }
 0x29b   : > { %1873 = vmatpush3.bf16.xpose.msra.mxu0 %v1872_v20  ;;  %1889 = vmatpush3.bf16.xpose.msra.mxu1 %v1872_v20 }
 0x2a0   : > { %v1619_v24 = vpop.permute.xlu1 %1618 }
 0x2a1   : > { %v1614_v45 = vpop.permute.xlu0 %1613 }
 0x2a2   : > { %1839 = vmatmul.mubr.f32.vlgmr.msra.gmra.mrb[0].mxu0 %v3360_v54  ;;  %1841 = vmatmul.mubr.f32.vlgmr.msra.gmra.mrb[0].mxu1 %v3365_v22 }
 0x375   : > { %v1687_v12 = vpop.f32.mrb[0].mxu0  ;;  %v1693_v13 = vpop.f32.mrb[0].mxu1 }
 0x376   : > { %v1688_v32 = vadd.f32 %v1687_v12, %v1614_v45  ;;  %v1694_v56 = vadd.f32 %v1693_v13, %v1619_v24  ;;  %v1689_v33 = vpop.f32.mrb[1].mxu0  ;;  %v1695_v54 = vpop.f32.mrb[1].mxu1 }
 0x377   : > { %v1690_v57 = vadd.f32 %v1689_v33, %v1614_v45  ;;  %v1696_v22 = vadd.f32 %v1695_v54, %v1619_v24 }
 0x378   : > { %1698 = vst [vmem:[%s177_s6] sm:$0xff] %v1688_v32  ;;  %1700 = vst [vmem:[%s177_s6 + $0x10] sm:$0xff] %v1694_v56 }
 0x379   : > { %1699 = vst [vmem:[%s177_s6 + $0x8] sm:$0xff] %v1690_v57  ;;  %1701 = vst [vmem:[%s177_s6 + $0x18] sm:$0xff] %v1696_v22 }
 0x37a   : > { %1972 = shalt.err (!%p1969_p5)
}
 0x37b   : > { %s1973_s26 = scalar_lea.hbm %s3448_s11, 512  ;;  %s1977_s29 = scalar_lea.hbm %s3500_s3, 1024 }
 0x37c   : > { %p1974_p6 = scmp.ne.s32.totalorder %s3448_s11, %s1973_s26  ;;  %p1978_p10 = scmp.lt.u32.totalorder %s3448_s11, %s3500_s3 }
 0x37d   : > { %p1979_p11 = scmp.lt.u32.totalorder %s1977_s29, %s1973_s26  ;;  %p1981_p13 = scmp.lt.u32.totalorder %s1973_s26, %s3448_s11 }
 0x37e   : > { %p1975_p7 = pnand %p1974_p6, %p2111_p4 }
 0x37f   : > { %p1980_p12 = por %p1979_p11, %p1978_p10 }
 0x380   : > { %p1976_p9 = pneg %p1975_p7 }
 0x381   : > { %p1982_p0 = por %p1981_p13, %p1980_p12 }
 0x383   : > { %p1983_p1 = pnand %p1982_p0, %p1976_p9 }
 0x385   : > { %1986 = shalt.err (!%p1983_p1)
}
 0x386   : > { %s2050_s6 = smov 256  }
 0x387   : > { %1891 = dma.vmem_to_hbm [thread:$0]  (%p2111_p4), %s3443_s7, 512, %s3448_s11, %s3450_s15, %s2050_s6, %s2050_s6, %s2041_s5  }
 0x388 PF: > { %p1897_p2 = scmp.ge.s32.totalorder %s2037_s17, 2  ;;  %s1733_s8 = sand.u32 1, %s2017_s12  }
 0x389   : > { %s1734_s9 = scalar_lea.sflag [#allocation4], %s1733_s8 }
 0x38a   : > { %p1894_p3 = pnand %p1897_p2, %p2118_p8 }
 0x38c   : > { %2012 = dma.done.wait (!%p1894_p3), %s1734_s9, 512  }
 0x38d   : > { %2014 = vsyncadd (!%p1894_p3), %s1734_s9, 4294966784  ;;  %s16_s17 = sadd.s32 1, %s2037_s17   ;;  %s3635_s12 = smov %s2021_s13 }
 0x38e   : > { %p13_p5 = scmp.ge.s32.totalorder %s16_s17, 4   ;;  %s3636_s13 = smov %s2025_s14 }
 0x38f   : > { %s3637_s14 = smov %s2124_s25  ;;  %s3638_s15 = smov %s2033_s16 }
 0x390   : > { %s3639_s16 = smov %s3641_s20  ;;  %15 = sbr.rel (!%p13_p5) target bundleno = 4 (0x4), region = 68 }
 0x397   :  { %1739 = vsyncpa [#allocation4], 1 }
 0x398   :  { %1741 = vsyncpa [#allocation4 + $0x1], 1 }

</bundles_post_ra>
